<compile_context>
chip_gen: v7x
topology: tpu7x:2x2x1
jax: 0.10.0
libtpu: 0.0.40
codegen_flags: <defaults>
</compile_context>

<pallas_src>
import jax
import jax.numpy as jnp
from jax.experimental import pallas as pl
from jax.experimental.pallas import tpu as pltpu


def _round_up(x, m):
    return (x + m - 1) // m * m


def naboe_kernel(word_emb_ref, ent_vec_ref, ent_ids_ref, prior_ref,
                 n_words_ref, att_w_ref, att_b_ref, out_w_ref, out_b_ref,
                 out_ref):
    f32 = jnp.float32
    hi = jax.lax.Precision.HIGHEST

    word_emb = word_emb_ref[...]                       # (TB, Lw, D)
    ent_vec = ent_vec_ref[...]                         # (TB, Le, D)

    # ---- word bag ----------------------------------------------------------
    word_sum = jnp.sum(word_emb, axis=1)               # (TB, D)

    # ---- norms (no normalized (TB,Le,D) tensor is materialized) ------------
    w_norm = jnp.maximum(
        jnp.sqrt(jnp.sum(word_sum * word_sum, axis=1, keepdims=True)),
        f32(1e-12))                                    # (TB, 1)
    e_norm = jnp.maximum(
        jnp.sqrt(jnp.sum(ent_vec * ent_vec, axis=2)),
        f32(1e-12))                                    # (TB, Le)

    # ---- cosine via batched contraction on the MXU --------------------------
    dots = jnp.einsum('bqd,bkd->bqk', word_sum[:, None, :], ent_vec,
                      preferred_element_type=f32, precision=hi)[:, 0, :]
    cos = dots / (w_norm * e_norm)                     # (TB, Le)

    # ---- attention Linear(2, 1) on cat(prior, cos) ---------------------------
    prior = prior_ref[...]                             # (TB, Le)
    logits = prior * att_w_ref[0] + cos * att_w_ref[1] + att_b_ref[0]

    # mask padding entities
    logits = jnp.where(ent_ids_ref[...] == 0, f32(-1e32), logits)

    # softmax over the entity-candidate axis
    m = jnp.max(logits, axis=1, keepdims=True)
    p = jnp.exp(logits - m)
    attn = p / jnp.sum(p, axis=1, keepdims=True)       # (TB, Le)

    # ---- attention-weighted pooling via batched MXU contraction -------------
    feat = jnp.einsum('bqk,bkd->bqd', attn[:, None, :], ent_vec,
                      preferred_element_type=f32, precision=hi)[:, 0, :]

    # ---- use_word branch: add mean word vector ------------------------------
    feat = feat + word_sum / n_words_ref[...]          # n_words: (TB, 1)

    # ---- output Linear(D, Cp) (lane-dense, Cp multiple of 128) ---------------
    out_ref[...] = (jnp.dot(feat, out_w_ref[...],
                            preferred_element_type=f32, precision=hi)
                    + out_b_ref[...])


def naboe_forward(word_ids, word_emb, entity_ids, ent_vec, prior_probs,
                  att_w, att_b, out_w, out_b, *, tile_b=128):
    B, Lw, D = word_emb.shape
    Le = ent_vec.shape[1]
    C = out_w.shape[1]

    # word count per row in glue (drops the (B, Lw) int32 tensor from VMEM).
    n_words = jnp.sum((word_ids != 0).astype(jnp.float32), axis=1,
                      keepdims=True)                   # (B, 1)

    # ---- pad batch to a tile multiple, classes to a lane-dense multiple ------
    tile_b = min(tile_b, _round_up(B, 8))
    B_pad = _round_up(B, tile_b)
    Cp = _round_up(C, 128)

    def pad_b(x, value=0):
        if B_pad == B:
            return x
        pad = [(0, B_pad - B)] + [(0, 0)] * (x.ndim - 1)
        return jnp.pad(x, pad, constant_values=value)

    word_emb_p = pad_b(word_emb)
    ent_vec_p = pad_b(ent_vec)
    ent_ids_p = pad_b(entity_ids)
    prior_p = pad_b(prior_probs)
    n_words_p = pad_b(n_words, value=1.0)              # avoid 0/0 on pad rows

    out_w_p = jnp.pad(out_w, ((0, 0), (0, Cp - C)))
    out_b_p = jnp.pad(out_b, ((0, 0), (0, Cp - C)))

    vmem = pltpu.MemorySpace.VMEM
    smem = pltpu.MemorySpace.SMEM

    # Rough scoped-VMEM budget: double-buffered blocks + resident weights.
    block_bytes = 4 * tile_b * ((Lw + Le) * D + 4 * Le + 8 + Cp) \
        + 4 * (D + 1) * Cp
    vmem_limit = int(min(max(4 * block_bytes, 16 << 20), 48 << 20))

    out = pl.pallas_call(
        naboe_kernel,
        out_shape=jax.ShapeDtypeStruct((B_pad, Cp), jnp.float32),
        grid=(B_pad // tile_b,),
        in_specs=[
            pl.BlockSpec((tile_b, Lw, D), lambda i: (i, 0, 0),
                         memory_space=vmem),           # word_emb
            pl.BlockSpec((tile_b, Le, D), lambda i: (i, 0, 0),
                         memory_space=vmem),           # ent_vec
            pl.BlockSpec((tile_b, Le), lambda i: (i, 0),
                         memory_space=vmem),           # entity_ids
            pl.BlockSpec((tile_b, Le), lambda i: (i, 0),
                         memory_space=vmem),           # prior_probs
            pl.BlockSpec((tile_b, 1), lambda i: (i, 0),
                         memory_space=vmem),           # n_words
            pl.BlockSpec(memory_space=smem),           # attention weight (2,)
            pl.BlockSpec(memory_space=smem),           # attention bias   (1,)
            pl.BlockSpec((D, Cp), lambda i: (0, 0),
                         memory_space=vmem),           # output weight
            pl.BlockSpec((1, Cp), lambda i: (0, 0),
                         memory_space=vmem),           # output bias
        ],
        out_specs=pl.BlockSpec((tile_b, Cp), lambda i: (i, 0),
                               memory_space=vmem),
        compiler_params=pltpu.CompilerParams(
            dimension_semantics=("parallel",),
            vmem_limit_bytes=vmem_limit),
    )(word_emb_p, ent_vec_p, ent_ids_p, prior_p, n_words_p,
      att_w, att_b, out_w_p, out_b_p)

    return out[:B, :C]


def naboe_reference(word_ids, word_emb, entity_ids, ent_vec, prior_probs,
                    att_w, att_b, out_w, out_b):
    """Pure-JAX reference mirroring the PyTorch forward (use_word=True, eval)."""
    word_sum = word_emb.sum(1)
    w_norm = jnp.maximum(jnp.linalg.norm(word_sum, axis=1, keepdims=True), 1e-12)
    word_norm_vec = word_sum / w_norm
    e_norm = jnp.maximum(jnp.linalg.norm(ent_vec, axis=2, keepdims=True), 1e-12)
    ent_norm_vec = ent_vec / e_norm
    cos = (word_norm_vec[:, None, :] * ent_norm_vec).sum(2)
    logits = prior_probs * att_w[0] + cos * att_w[1] + att_b[0]
    logits = jnp.where(entity_ids == 0, -1e32, logits)
    attn = jax.nn.softmax(logits, axis=1)
    feat = (ent_vec * attn[:, :, None]).sum(1)
    n_words = (word_ids != 0).sum(1, keepdims=True).astype(jnp.float32)
    feat = feat + word_sum / n_words
    return jnp.matmul(feat, out_w, precision=jax.lax.Precision.HIGHEST) + out_b


if __name__ == "__main__":
    key = jax.random.PRNGKey(0)
    ks = jax.random.split(key, 10)

    vocab_w, vocab_e = 50, 40        # vocabulary sizes
    D, C = 32, 4                     # embedding dim, num_classes
    B, Lw, Le = 2, 8, 8              # batch, #words, #entity candidates

    # Deterministic "pretrained" embedding tables (row 0 = padding -> zeros).
    word_table = jax.random.normal(ks[0], (vocab_w, D), jnp.float32)
    word_table = word_table.at[0].set(0.0)
    ent_table = jax.random.normal(ks[1], (vocab_e, D), jnp.float32)
    ent_table = ent_table.at[0].set(0.0)

    # Attention layer nn.Linear(2, 1) and output layer nn.Linear(D, C) params.
    att_w = jax.random.normal(ks[2], (2,), jnp.float32) * 0.5
    att_b = jax.random.normal(ks[3], (1,), jnp.float32) * 0.1
    out_w = jax.random.normal(ks[4], (D, C), jnp.float32) * 0.1
    out_b = jnp.reshape(jax.random.normal(ks[5], (C,), jnp.float32) * 0.1, (1, C))

    # Inputs.
    word_ids = jax.random.randint(ks[6], (B, Lw), 1, vocab_w, jnp.int32)
    word_ids = word_ids.at[:, -2:].set(0)        # some word padding
    entity_ids = jax.random.randint(ks[7], (B, Le), 1, vocab_e, jnp.int32)
    entity_ids = entity_ids.at[:, -3:].set(0)    # some entity padding
    prior_probs = jax.random.uniform(ks[8], (B, Le), jnp.float32)

    # Embedding gathers (glue, outside the kernel).
    word_emb = word_table[word_ids]              # (B, Lw, D)
    ent_vec = ent_table[entity_ids]              # (B, Le, D)

    out = naboe_forward(word_ids, word_emb, entity_ids, ent_vec, prior_probs,
                        att_w, att_b, out_w, out_b)
    out = jax.block_until_ready(out)

    ref = naboe_reference(word_ids, word_emb, entity_ids, ent_vec, prior_probs,
                          att_w, att_b, out_w, out_b)
    assert out.shape == (B, C)
    assert jnp.allclose(out, ref, rtol=1e-4, atol=1e-4), (out, ref)
    print("KERNEL_OK")
</pallas_src>

<mosaic_0001>
module attributes {stable_mosaic.version = 11 : i64} {
  func.func @naboe_kernel(%arg0: i32, %arg1: memref<8x8x32xf32, #tpu.memory_space<vmem>>, %arg2: memref<8x8x32xf32, #tpu.memory_space<vmem>>, %arg3: memref<8x8xi32, #tpu.memory_space<vmem>>, %arg4: memref<8x8xf32, #tpu.memory_space<vmem>>, %arg5: memref<8x1xf32, #tpu.memory_space<vmem>>, %arg6: memref<2xf32, #tpu.memory_space<smem>>, %arg7: memref<1xf32, #tpu.memory_space<smem>>, %arg8: memref<32x128xf32, #tpu.memory_space<vmem>>, %arg9: memref<1x128xf32, #tpu.memory_space<vmem>>, %arg10: memref<8x128xf32, #tpu.memory_space<vmem>>) attributes {dimension_semantics = [#tpu.dimension_semantics<parallel>], iteration_bounds = array<i64: 1>, scalar_prefetch = 0 : i64, scratch_operands = 0 : i64, tpu.core_type = #tpu.core_type<tc>, window_params = [{transform_indices = @transform_0, window_bounds = array<i64: 8, 8, 32>}, {transform_indices = @transform_1, window_bounds = array<i64: 8, 8, 32>}, {transform_indices = @transform_2, window_bounds = array<i64: 8, 8>}, {transform_indices = @transform_3, window_bounds = array<i64: 8, 8>}, {transform_indices = @transform_4, window_bounds = array<i64: 8, 1>}, {transform_indices = @transform_5, window_bounds = array<i64: 2>}, {transform_indices = @transform_6, window_bounds = array<i64: 1>}, {pipeline_mode = #tpu.pipeline_mode<synchronous>, transform_indices = @transform_7, window_bounds = array<i64: 32, 128>}, {pipeline_mode = #tpu.pipeline_mode<synchronous>, transform_indices = @transform_8, window_bounds = array<i64: 1, 128>}, {transform_indices = @transform_9, window_bounds = array<i64: 8, 128>}]} {
    %c0 = arith.constant 0 : index
    %c0_0 = arith.constant 0 : index
    %c0_1 = arith.constant 0 : index
    %0 = vector.load %arg1[%c0, %c0_0, %c0_1] : memref<8x8x32xf32, #tpu.memory_space<vmem>>, vector<8x8x32xf32>
    %c0_2 = arith.constant 0 : index
    %c0_3 = arith.constant 0 : index
    %c0_4 = arith.constant 0 : index
    %1 = vector.load %arg2[%c0_2, %c0_3, %c0_4] : memref<8x8x32xf32, #tpu.memory_space<vmem>>, vector<8x8x32xf32>
    %cst = arith.constant dense<0.000000e+00> : vector<8x32xf32>
    %2 = vector.multi_reduction <add>, %0, %cst [1] : vector<8x8x32xf32> to vector<8x32xf32>
    %3 = arith.mulf %2, %2 : vector<8x32xf32>
    %cst_5 = arith.constant dense<0.000000e+00> : vector<8xf32>
    %4 = vector.multi_reduction <add>, %3, %cst_5 [1] : vector<8x32xf32> to vector<8xf32>
    %5 = vector.shape_cast %4 : vector<8xf32> to vector<8x1xf32>
    %6 = math.sqrt %5 : vector<8x1xf32>
    %cst_6 = arith.constant 9.99999996E-13 : f32
    %7 = vector.broadcast %cst_6 : f32 to vector<8x1xf32>
    %8 = arith.maximumf %6, %7 : vector<8x1xf32>
    %9 = arith.mulf %1, %1 : vector<8x8x32xf32>
    %cst_7 = arith.constant dense<0.000000e+00> : vector<8x8xf32>
    %10 = vector.multi_reduction <add>, %9, %cst_7 [2] : vector<8x8x32xf32> to vector<8x8xf32>
    %11 = math.sqrt %10 : vector<8x8xf32>
    %cst_8 = arith.constant 9.99999996E-13 : f32
    %12 = vector.broadcast %cst_8 : f32 to vector<8x8xf32>
    %13 = arith.maximumf %11, %12 : vector<8x8xf32>
    %14 = vector.shape_cast %2 : vector<8x32xf32> to vector<8x1x32xf32>
    "tpu.trace_start"() <{level = 10 : i32, message = "bqd,bkd->bqk"}> : () -> ()
    %cst_9 = arith.constant dense<0.000000e+00> : vector<8x1x8xf32>
    %15 = tpu.matmul %14, %1, %cst_9 {dimension_numbers = #tpu.dot_dimension_numbers<[2], [2], [1], [1], [0, 0, 0, 1, 1, 1], [0], [0]>, precision = #tpu.contract_precision<fp32>} : vector<8x1x32xf32>, vector<8x8x32xf32>, vector<8x1x8xf32> -> vector<8x1x8xf32>
    "tpu.trace_stop"() : () -> ()
    %16 = vector.shape_cast %15 : vector<8x1x8xf32> to vector<8x8xf32>
    %17 = vector.broadcast %8 : vector<8x1xf32> to vector<8x8xf32>
    %18 = arith.mulf %17, %13 : vector<8x8xf32>
    %19 = arith.divf %16, %18 : vector<8x8xf32>
    %c0_10 = arith.constant 0 : index
    %c0_11 = arith.constant 0 : index
    %20 = vector.load %arg4[%c0_10, %c0_11] : memref<8x8xf32, #tpu.memory_space<vmem>>, vector<8x8xf32>
    %c0_12 = arith.constant 0 : index
    %21 = memref.load %arg6[%c0_12] : memref<2xf32, #tpu.memory_space<smem>>
    %22 = vector.broadcast %21 : f32 to vector<8x8xf32>
    %23 = arith.mulf %20, %22 : vector<8x8xf32>
    %c1 = arith.constant 1 : index
    %24 = memref.load %arg6[%c1] : memref<2xf32, #tpu.memory_space<smem>>
    %25 = vector.broadcast %24 : f32 to vector<8x8xf32>
    %26 = arith.mulf %19, %25 : vector<8x8xf32>
    %27 = arith.addf %23, %26 : vector<8x8xf32>
    %c0_13 = arith.constant 0 : index
    %28 = memref.load %arg7[%c0_13] : memref<1xf32, #tpu.memory_space<smem>>
    %29 = vector.broadcast %28 : f32 to vector<8x8xf32>
    %30 = arith.addf %27, %29 : vector<8x8xf32>
    %c0_14 = arith.constant 0 : index
    %c0_15 = arith.constant 0 : index
    %31 = vector.load %arg3[%c0_14, %c0_15] : memref<8x8xi32, #tpu.memory_space<vmem>>, vector<8x8xi32>
    %c0_i32 = arith.constant 0 : i32
    %32 = vector.broadcast %c0_i32 : i32 to vector<8x8xi32>
    %33 = arith.cmpi eq, %31, %32 : vector<8x8xi32>
    %cst_16 = arith.constant -1.000000e+32 : f32
    %34 = vector.broadcast %cst_16 : f32 to vector<8x8xf32>
    %35 = arith.select %33, %34, %30 : vector<8x8xi1>, vector<8x8xf32>
    %cst_17 = arith.constant dense<0xFF800000> : vector<8xf32>
    %36 = vector.multi_reduction <maximumf>, %35, %cst_17 [1] : vector<8x8xf32> to vector<8xf32>
    %37 = vector.shape_cast %36 : vector<8xf32> to vector<8x1xf32>
    %38 = vector.broadcast %37 : vector<8x1xf32> to vector<8x8xf32>
    %39 = arith.subf %35, %38 : vector<8x8xf32>
    %40 = math.exp %39 : vector<8x8xf32>
    %cst_18 = arith.constant dense<0.000000e+00> : vector<8xf32>
    %41 = vector.multi_reduction <add>, %40, %cst_18 [1] : vector<8x8xf32> to vector<8xf32>
    %42 = vector.shape_cast %41 : vector<8xf32> to vector<8x1xf32>
    %43 = vector.broadcast %42 : vector<8x1xf32> to vector<8x8xf32>
    %44 = arith.divf %40, %43 : vector<8x8xf32>
    %45 = vector.shape_cast %44 : vector<8x8xf32> to vector<8x1x8xf32>
    "tpu.trace_start"() <{level = 10 : i32, message = "bqk,bkd->bqd"}> : () -> ()
    %cst_19 = arith.constant dense<0.000000e+00> : vector<8x1x32xf32>
    %46 = tpu.matmul %45, %1, %cst_19 {dimension_numbers = #tpu.dot_dimension_numbers<[2], [1], [1], [2], [0, 0, 0, 1, 1, 2], [0], [0]>, precision = #tpu.contract_precision<fp32>} : vector<8x1x8xf32>, vector<8x8x32xf32>, vector<8x1x32xf32> -> vector<8x1x32xf32>
    "tpu.trace_stop"() : () -> ()
    %47 = vector.shape_cast %46 : vector<8x1x32xf32> to vector<8x32xf32>
    %c0_20 = arith.constant 0 : index
    %c0_21 = arith.constant 0 : index
    %48 = vector.load %arg5[%c0_20, %c0_21] : memref<8x1xf32, #tpu.memory_space<vmem>>, vector<8x1xf32>
    %49 = vector.broadcast %48 : vector<8x1xf32> to vector<8x32xf32>
    %50 = arith.divf %2, %49 : vector<8x32xf32>
    %51 = arith.addf %47, %50 : vector<8x32xf32>
    %c0_22 = arith.constant 0 : index
    %c0_23 = arith.constant 0 : index
    %52 = vector.load %arg8[%c0_22, %c0_23] : memref<32x128xf32, #tpu.memory_space<vmem>>, vector<32x128xf32>
    %cst_24 = arith.constant dense<0.000000e+00> : vector<8x128xf32>
    %53 = tpu.matmul %51, %52, %cst_24 {dimension_numbers = #tpu.dot_dimension_numbers<[1], [0], [0], [1], [0, 0, 1, 1], [], []>, precision = #tpu.contract_precision<fp32>} : vector<8x32xf32>, vector<32x128xf32>, vector<8x128xf32> -> vector<8x128xf32>
    %c0_25 = arith.constant 0 : index
    %c0_26 = arith.constant 0 : index
    %54 = vector.load %arg9[%c0_25, %c0_26] : memref<1x128xf32, #tpu.memory_space<vmem>>, vector<1x128xf32>
    %55 = vector.broadcast %54 : vector<1x128xf32> to vector<8x128xf32>
    %56 = arith.addf %53, %55 : vector<8x128xf32>
    %c0_27 = arith.constant 0 : index
    %c0_28 = arith.constant 0 : index
    %57 = vector.load %arg10[%c0_27, %c0_28] : memref<8x128xf32, #tpu.memory_space<vmem>>, vector<8x128xf32>
    tpu.vector_store %arg10[%c0_27, %c0_28], %56 {strides = array<i32>} : memref<8x128xf32, #tpu.memory_space<vmem>>, vector<8x128xf32>,
    return
  }
  func.func @transform_0(%arg0: i32) -> (i32, i32, i32) {
    %c0_i32 = arith.constant 0 : i32
    %c0_i32_0 = arith.constant 0 : i32
    %c0_i32_1 = arith.constant 0 : i32
    return %arg0, %c0_i32, %c0_i32_0 : i32, i32, i32
  }
  func.func @transform_1(%arg0: i32) -> (i32, i32, i32) {
    %c0_i32 = arith.constant 0 : i32
    %c0_i32_0 = arith.constant 0 : i32
    %c0_i32_1 = arith.constant 0 : i32
    return %arg0, %c0_i32, %c0_i32_0 : i32, i32, i32
  }
  func.func @transform_2(%arg0: i32) -> (i32, i32) {
    %c0_i32 = arith.constant 0 : i32
    %c0_i32_0 = arith.constant 0 : i32
    return %arg0, %c0_i32 : i32, i32
  }
  func.func @transform_3(%arg0: i32) -> (i32, i32) {
    %c0_i32 = arith.constant 0 : i32
    %c0_i32_0 = arith.constant 0 : i32
    return %arg0, %c0_i32 : i32, i32
  }
  func.func @transform_4(%arg0: i32) -> (i32, i32) {
    %c0_i32 = arith.constant 0 : i32
    %c0_i32_0 = arith.constant 0 : i32
    return %arg0, %c0_i32 : i32, i32
  }
  func.func @transform_5(%arg0: i32) -> i32 {
    %c0_i32 = arith.constant 0 : i32
    %c0_i32_0 = arith.constant 0 : i32
    return %c0_i32 : i32
  }
  func.func @transform_6(%arg0: i32) -> i32 {
    %c0_i32 = arith.constant 0 : i32
    %c0_i32_0 = arith.constant 0 : i32
    return %c0_i32 : i32
  }
  func.func @transform_7(%arg0: i32) -> (i32, i32) {
    %c0_i32 = arith.constant 0 : i32
    %c0_i32_0 = arith.constant 0 : i32
    %c0_i32_1 = arith.constant 0 : i32
    return %c0_i32, %c0_i32_0 : i32, i32
  }
  func.func @transform_8(%arg0: i32) -> (i32, i32) {
    %c0_i32 = arith.constant 0 : i32
    %c0_i32_0 = arith.constant 0 : i32
    %c0_i32_1 = arith.constant 0 : i32
    return %c0_i32, %c0_i32_0 : i32, i32
  }
  func.func @transform_9(%arg0: i32) -> (i32, i32) {
    %c0_i32 = arith.constant 0 : i32
    %c0_i32_0 = arith.constant 0 : i32
    return %arg0, %c0_i32 : i32, i32
  }
}

</mosaic_0001>

<bundles_post_ra>
// kernel: tpu_custom_call.1
= control target key start
LH: loop header
LB: loop body
LE: loop exit
PB: predicated region body
PF: predicated region fallthrough
CT: control target
= control target key end

     0   :  { %15 = vsyncpa [#allocation4], 0  ;;  %s10404_s0 = inlined_call_operand.hbm [shape: f32[8,8,32], index: 0, kind: input, shape index: {}]   ;;  %s10405_s1 = inlined_call_operand.hbm [shape: f32[8,8,32], index: 1, kind: input, shape index: {}]   ;;  %s10406_s2 = inlined_call_operand.hbm [shape: s32[8,8], index: 2, kind: input, shape index: {}]   ;;  %s10407_s3 = inlined_call_operand.hbm [shape: f32[8,8], index: 3, kind: input, shape index: {}]   ;;  %s10408_s4 = inlined_call_operand.vmem [shape: f32[8,1], index: 4, kind: input, shape index: {}]   ;;  %s10409_s5 = inlined_call_operand.vmem [shape: f32[2], index: 5, kind: input, shape index: {}]   ;;  %s10410_s6 = inlined_call_operand.<no memory space> [shape: f32[1], index: 6, kind: input, shape index: {}]   ;;  %s10411_s7 = inlined_call_operand.vmem [shape: f32[32,128], index: 7, kind: input, shape index: {}]   ;;  %s10412_s8 = inlined_call_operand.vmem [shape: f32[1,128], index: 8, kind: input, shape index: {}]   ;;  %s10413_s9 = inlined_call_operand.hbm [shape: f32[8,128], index: 9, kind: output, shape index: {}]  }
   0x1   :  { %16 = vsyncpa [#allocation8], 0 }
   0x2   :  { %17 = vsyncpa [#allocation11], 0 }
   0x3   :  { %18 = vsyncpa [#allocation6], 0 }
   0x4   :  { %19 = vsyncpa [#allocation5], 0  ;;  %s9386_s30 = smov [#allocation7]   ;;  %s9387_s11 = smov [#allocation3]  }
   0x5   :  { %s37_s10 = sshll.u32 %s9386_s30, 4  ;;  %s25_s12 = sshll.u32 %s9387_s11, 4  ;;  %s38_s10 = int_to_ptr.vmem [resolvable:$true] %s37_s10  ;;  %s9449_s12 = int_to_ptr.vmem [resolvable:$true] %s25_s12 }
   0x6   :  { %s9254_s15 = scalar_lea.hbm %s10405_s1, 1024 }
   0x7   :  { %p9255_p0 = scmp.ne.s32.totalorder %s10405_s1, %s9254_s15  ;;  %p9258_p1 = scmp.lt.u32.totalorder %s9254_s15, %s10405_s1 }
   0x9   :  { %p9260_p2 = pnand %p9258_p1, %p9255_p0 }
   0xb   :  { %9263 = shalt.err (!%p9260_p2)
}
   0xc   :  { %s9264_s20 = scalar_lea.vmem %s38_s10, 1024  ;;  %p9269_p4 = scmp.lt.s32.totalorder %s38_s10, %s38_s10 }
   0xd   :  { %p9265_p3 = scmp.ne.s32.totalorder %s38_s10, %s9264_s20  ;;  %p9270_p5 = scmp.lt.s32.totalorder %s9264_s20, %s9264_s20 }
   0xf   :  { %p9271_p6 = por %p9270_p5, %p9269_p4 }
  0x11   :  { %p9272_p7 = pnand %p9271_p6, %p9265_p3 }
  0x13   :  { %9275 = shalt.err (!%p9272_p7)
}
  0x14   :  { %s9388_s21 = smov 128   ;;  %s9389_s22 = smov 8  }
  0x15   :  { %43 = dma.hbm_to_vmem [thread:$0]  %s10405_s1, 1024, %s38_s10, [#allocation8], %s9388_s21, %s9388_s21, %s9389_s22  }
  0x16   :  { %s9276_s27 = scalar_lea.hbm %s10404_s0, 1024 }
  0x17   :  { %p9277_p8 = scmp.ne.s32.totalorder %s10404_s0, %s9276_s27  ;;  %p9280_p9 = scmp.lt.u32.totalorder %s9276_s27, %s10404_s0 }
  0x19   :  { %p9282_p10 = pnand %p9280_p9, %p9277_p8 }
  0x1b   :  { %9285 = shalt.err (!%p9282_p10)
}
  0x1c   :  { %s9286_s13 = scalar_lea.vmem %s9449_s12, 1024  ;;  %p9291_p12 = scmp.lt.s32.totalorder %s9449_s12, %s9449_s12 }
  0x1d   :  { %p9287_p11 = scmp.ne.s32.totalorder %s9449_s12, %s9286_s13  ;;  %p9292_p13 = scmp.lt.s32.totalorder %s9286_s13, %s9286_s13 }
  0x1f   :  { %p9293_p0 = por %p9292_p13, %p9291_p12 }
  0x21   :  { %p9294_p1 = pnand %p9293_p0, %p9287_p11 }
  0x23   :  { %9297 = shalt.err (!%p9294_p1)
}
  0x24   :  { %31 = dma.hbm_to_vmem [thread:$0]  %s10404_s0, 1024, %s9449_s12, [#allocation4], %s9388_s21, %s9388_s21, %s9389_s22  }
  0x25   :  { %s9390_s14 = smov [#allocation9]   ;;  %s9391_s16 = smov [#allocation10]  }
  0x26   :  { %s50_s15 = sshll.u32 %s9390_s14, 4  ;;  %s60_s17 = sshll.u32 %s9391_s16, 4  ;;  %s51_s15 = int_to_ptr.vmem [resolvable:$true] %s50_s15  ;;  %s61_s17 = int_to_ptr.vmem [resolvable:$true] %s60_s17 }
  0x27   :  { %s9298_s20 = scalar_lea.hbm %s10406_s2, 128 }
  0x28   :  { %p9299_p2 = scmp.ne.s32.totalorder %s10406_s2, %s9298_s20  ;;  %p9302_p3 = scmp.lt.u32.totalorder %s9298_s20, %s10406_s2 }
  0x2a   :  { %p9304_p4 = pnand %p9302_p3, %p9299_p2 }
  0x2c   :  { %9307 = shalt.err (!%p9304_p4)
}
  0x2d   :  { %s9308_s0 = scalar_lea.vmem %s51_s15, 128  ;;  %p9313_p6 = scmp.lt.s32.totalorder %s51_s15, %s51_s15 }
  0x2e   :  { %p9309_p5 = scmp.ne.s32.totalorder %s51_s15, %s9308_s0  ;;  %p9314_p7 = scmp.lt.s32.totalorder %s9308_s0, %s9308_s0 }
  0x30   :  { %p9315_p8 = por %p9314_p7, %p9313_p6 }
  0x32   :  { %p9316_p9 = pnand %p9315_p8, %p9309_p5 }
  0x34   :  { %9319 = shalt.err (!%p9316_p9)
}
  0x35   :  { %53 = dma.hbm_to_vmem [thread:$0]  %s10406_s2, 128, %s51_s15, [#allocation8]  }
  0x36   :  { %s9320_s28 = scalar_lea.hbm %s10407_s3, 128 }
  0x37   :  { %p9321_p10 = scmp.ne.s32.totalorder %s10407_s3, %s9320_s28  ;;  %p9324_p11 = scmp.lt.u32.totalorder %s9320_s28, %s10407_s3 }
  0x39   :  { %p9326_p12 = pnand %p9324_p11, %p9321_p10 }
  0x3b   :  { %9329 = shalt.err (!%p9326_p12)
}
  0x3c   :  { %s9330_s1 = scalar_lea.vmem %s61_s17, 128  ;;  %p9335_p0 = scmp.lt.s32.totalorder %s61_s17, %s61_s17 }
  0x3d   :  { %p9331_p13 = scmp.ne.s32.totalorder %s61_s17, %s9330_s1  ;;  %p9336_p1 = scmp.lt.s32.totalorder %s9330_s1, %s9330_s1 }
  0x3f   :  { %p9337_p2 = por %p9336_p1, %p9335_p0 }
  0x41   :  { %p9338_p3 = pnand %p9337_p2, %p9331_p13 }
  0x43   :  { %9341 = shalt.err (!%p9338_p3)
}
  0x44   :  { %63 = dma.hbm_to_vmem [thread:$0]  %s10407_s3, 128, %s61_s17, [#allocation11]  }
  0x45   :  { %s72_s16 = sshll.u32 %s10409_s5, 4  ;;  %s73_s16 = int_to_ptr.vmem [resolvable:$true] %s72_s16 }
  0x46   :  { %s9342_s18 = scalar_lea.vmem %s73_s16, 16  ;;  %p9347_p5 = scmp.lt.s32.totalorder %s73_s16, %s73_s16 }
  0x47   :  { %p9343_p4 = scmp.ne.s32.totalorder %s73_s16, %s9342_s18  ;;  %p9348_p6 = scmp.lt.s32.totalorder %s9342_s18, %s9342_s18 }
  0x49   :  { %p9349_p7 = por %p9348_p6, %p9347_p5 }
  0x4b   :  { %p9350_p8 = pnand %p9349_p7, %p9343_p4 }
  0x4d   :  { %9353 = shalt.err (!%p9350_p8)
}
  0x4e   :  { %s9392_s19 = smov [#allocation12]  }
  0x4f   :  { %75 = dma.vmem_to_smem %s73_s16, 16, %s9392_s19, [#allocation6]  }
  0x50   :  { %9376 = dma.done.wait [#allocation4], 1024  }
  0x51   :  { %9377 = vsyncadd [#allocation4], 4294966272 }
  0x52   :  { %9378 = dma.done.wait [#allocation8], 1152  }
  0x53   :  { %9379 = vsyncadd [#allocation8], 4294966144 }
  0x54   :  { %9380 = dma.done.wait [#allocation11], 128  }
  0x55   :  { %9381 = vsyncadd [#allocation11], 4294967168 }
  0x56   :  { %9382 = dma.done.wait [#allocation6], 16  }
  0x57   :  { %9383 = vsyncadd [#allocation6], 4294967280 }
  0x58   :  { %97 = sfence }
  0x59   :  { %v9507_v0 = vld [vmem:[#allocation7] sm:$0xff]  ;;  %vm10414_vm0 = vcmask 261120   ;;  %v107_v1 = vld [vmem:[#allocation7 + $0x8] sm:$0xff]  ;;  %v9393_v3 = vmov 0.0   ;;  %vm9394_vm1 = vmmov 0   ;;  %v100_v13 = vld [vmem:[#allocation3 + $0x10] sm:$0xff] }
  0x5a   :  { %v98_v2 = vld [vmem:[#allocation3] sm:$0xff]  ;;  %8505 = vmatprep.subr.mxu0 %v9393_v3  ;;  %v313_v4 = vsel %vm10414_vm0, %v9507_v0, 0  ;;  %8535 = vmatprep.subr.mxu1 %v9393_v3  ;;  %v765_v5 = vsel %vm10414_vm0, %v107_v1, 0  ;;  %v99_v6 = vld [vmem:[#allocation3 + $0x8] sm:$0xff]  ;;  %v101_v16 = vld [vmem:[#allocation3 + $0x18] sm:$0xff]  ;;  %v129_v17 = vsel %vm10414_vm0, %v100_v13, 0.0  ;;  %v213_v31 = vmul.f32 %v9507_v0, %v9507_v0 }
  0x5b   :  { %v9514_v7 = vand.u32 4294901760, %v313_v4  ;;  %v9516_v8 = vand.u32 4294901760, %v765_v5  ;;  %8507 = vmatprep.mubr.msk.f32.mxu0 %vm9394_vm1, %v9393_v3  ;;  %8537 = vmatprep.mubr.msk.f32.mxu1 %vm9394_vm1, %v9393_v3  ;;  %v115_v9 = vsel %vm10414_vm0, %v98_v2, 0.0  ;;  %v122_v10 = vsel %vm10414_vm0, %v99_v6, 0.0  ;;  %v9536_v28 = vld [vmem:[#allocation7 + $0x10] sm:$0xff]  ;;  %v9549_v39 = vld [vmem:[#allocation7 + $0x20] sm:$0xff] }
  0x5c   :  { %v116_v11 = vrot.slane %v115_v9, 4  ;;  %v123_v12 = vrot.slane %v122_v10, 4  ;;  %v130_v20 = vrot.slane %v129_v17, 4  ;;  %v136_v21 = vsel %vm10414_vm0, %v101_v16, 0.0  ;;  %v9560_v46 = vld [vmem:[#allocation7 + $0x18] sm:$0xff]  ;;  %v9562_v48 = vld [vmem:[#allocation7 + $0x28] sm:$0xff] }
  0x5d   :  { %8506 = vmatpush3.xpose.msra.mxu0 %v9514_v7  ;;  %8536 = vmatpush3.xpose.msra.mxu1 %v9516_v8  ;;  %v9531_v24 = vsub.f32 %v313_v4, %v9514_v7  ;;  %v9534_v25 = vsub.f32 %v765_v5, %v9516_v8  ;;  %v137_v29 = vrot.slane %v136_v21, 4  ;;  %v215_v32 = vmul.f32 %v9536_v28, %v9536_v28  ;;  %v9587_v63 = vld [vmem:[#allocation7 + $0x30] sm:$0xff]  ;;  %v9590_v2 = vld [vmem:[#allocation7 + $0x38] sm:$0xff]  ;;  %v102_v6 = vld [vmem:[#allocation3 + $0x20] sm:$0xff]  ;;  %s8281_s3 = sld [smem:[#allocation12 + $0x1]]  ;;  %s4009_s5 = sld [smem:[#allocation12]] }
  0x5e   :  { %8510 = vmatprep.subr.mxu0 %v9393_v3  ;;  %v117_v14 = vadd.f32 %v116_v11, %v115_v9  ;;  %v124_v15 = vadd.f32 %v123_v12, %v122_v10  ;;  %8540 = vmatprep.subr.mxu1 %v9393_v3  ;;  %v131_v30 = vadd.f32 %v130_v20, %v129_v17  ;;  %v221_v36 = vsel %vm10414_vm0, %v213_v31, 0.0  ;;  %v103_v13 = vld [vmem:[#allocation3 + $0x28] sm:$0xff]  ;;  %v105_v20 = vld [vmem:[#allocation3 + $0x38] sm:$0xff]  ;;  %s9398_s28 = smov [#allocation13]  }
  0x5f   :  { %v394_v35 = vand.u32 4294901760, %v9531_v24  ;;  %v227_v37 = vsel %vm10414_vm0, %v215_v32, 0.0  ;;  %v214_v38 = vmul.f32 %v107_v1, %v107_v1  ;;  %v846_v42 = vand.u32 4294901760, %v9534_v25  ;;  %222 = vadd.xlane.f32.xlu0 %v221_v36  ;;  %s8269_s29 = sshll.u32 %s9398_s28, 4  ;;  %s8270_s29 = int_to_ptr.vmem [resolvable:$true] %s8269_s29 }
  0x60   :  { %v118_v18 = vrot.slane %v117_v14, 2  ;;  %v125_v19 = vrot.slane %v124_v15, 2  ;;  %v138_v43 = vadd.f32 %v137_v29, %v136_v21  ;;  %228 = vadd.xlane.f32.xlu1 %v227_v37  ;;  %v132_v47 = vrot.slane %v131_v30, 2  ;;  %s9354_s30 = scalar_lea.vmem %s8270_s29, 128  ;;  %p9359_p10 = scmp.lt.s32.totalorder %s8270_s29, %s8270_s29 }
  0x61   :  { %v224_v49 = vsel %vm10414_vm0, %v214_v38, 0.0  ;;  %v216_v50 = vmul.f32 %v9560_v46, %v9560_v46  ;;  %v217_v51 = vmul.f32 %v9549_v39, %v9549_v39  ;;  %v395_v53 = vsub.f32 %v9531_v24, %v394_v35  ;;  %p9355_p9 = scmp.ne.s32.totalorder %s8270_s29, %s9354_s30  ;;  %p9360_p11 = scmp.lt.s32.totalorder %s9354_s30, %s9354_s30 }
  0x62   :  { %v119_v22 = vadd.f32 %v118_v18, %v117_v14  ;;  %v126_v23 = vadd.f32 %v125_v19, %v124_v15  ;;  %v847_v55 = vsub.f32 %v9534_v25, %v846_v42  ;;  %v139_v56 = vrot.slane %v138_v43, 2  ;;  %v104_v14 = vld [vmem:[#allocation3 + $0x30] sm:$0xff] }
  0x63   :  { %225 = vadd.xlane.f32.xlu0 %v224_v49  ;;  %v230_v57 = vsel %vm10414_vm0, %v216_v50, 0.0  ;;  %v218_v58 = vmul.f32 %v9562_v48, %v9562_v48  ;;  %v133_v61 = vadd.f32 %v132_v47, %v131_v30  ;;  %v233_v62 = vsel %vm10414_vm0, %v217_v51, 0.0  ;;  %p9361_p12 = por %p9360_p11, %p9359_p10 }
  0x64   :  { %v120_v26 = vrot.slane %v119_v22, 1  ;;  %v127_v27 = vrot.slane %v126_v23, 1  ;;  %231 = vadd.xlane.f32.xlu1 %v230_v57  ;;  %v396_v9 = vand.u32 4294901760, %v395_v53  ;;  %v848_v10 = vand.u32 4294901760, %v847_v55 }
  0x65   :  { %v236_v1 = vsel %vm10414_vm0, %v218_v58, 0.0  ;;  %v140_v11 = vadd.f32 %v139_v56, %v138_v43  ;;  %v219_v12 = vmul.f32 %v9587_v63, %v9587_v63  ;;  %v134_v17 = vrot.slane %v133_v61, 1  ;;  %p9362_p13 = pnand %p9361_p12, %p9355_p9 }
  0x66   :  { %v9542_v33 = vadd.f32 %v120_v26, %v119_v22  ;;  %v9544_v34 = vadd.f32 %v127_v27, %v126_v23  ;;  %v220_v18 = vmul.f32 %v9590_v2, %v9590_v2  ;;  %v143_v21 = vsel %vm10414_vm0, %v102_v6, 0.0 }
  0x67   :  { %234 = vadd.xlane.f32.xlu0 %v233_v62  ;;  %v144_v23 = vrot.slane %v143_v21, 4  ;;  %v150_v26 = vsel %vm10414_vm0, %v103_v13, 0.0  ;;  %v157_v27 = vsel %vm10414_vm0, %v104_v14, 0.0  ;;  %v141_v29 = vrot.slane %v140_v11, 1 }
  0x68   :  { %v310_v40 = vsel %vm10414_vm0, %v9542_v33, 0  ;;  %v762_v41 = vsel %vm10414_vm0, %v9544_v34, 0  ;;  %237 = vadd.xlane.f32.xlu1 %v236_v1  ;;  %v171_v19 = vmul.f32 %v9542_v33, %v9542_v33  ;;  %v172_v22 = vmul.f32 %v9544_v34, %v9544_v34 }
  0x69   :  { %v9556_v44 = vand.u32 4294901760, %v310_v40  ;;  %v9558_v45 = vand.u32 4294901760, %v762_v41  ;;  %v239_v30 = vsel %vm10414_vm0, %v219_v12, 0.0  ;;  %v242_v31 = vsel %vm10414_vm0, %v220_v18, 0.0 }
  0x6a   :  { %v151_v32 = vrot.slane %v150_v26, 4  ;;  %v9614_v36 = vadd.f32 %v134_v17, %v133_v61  ;;  %v145_v37 = vadd.f32 %v144_v23, %v143_v21  ;;  %v158_v38 = vrot.slane %v157_v27, 4 }
  0x6b   :  { %v9570_v52 = vsub.f32 %v310_v40, %v9556_v44  ;;  %v9576_v54 = vsub.f32 %v762_v41, %v9558_v45  ;;  %v164_v40 = vsel %vm10414_vm0, %v105_v20, 0.0  ;;  %240 = vadd.xlane.f32.xlu0 %v239_v30  ;;  %vm187_vm2 = vcmask 1041409  }
  0x6c   :  { %v152_v41 = vadd.f32 %v151_v32, %v150_v26  ;;  %v165_v43 = vrot.slane %v164_v40, 4  ;;  %243 = vadd.xlane.f32.xlu1 %v242_v31  ;;  %v146_v47 = vrot.slane %v145_v37, 2  ;;  %v159_v49 = vadd.f32 %v158_v38, %v157_v27 }
  0x6d   :  { %v383_v59 = vand.u32 4294901760, %v9570_v52  ;;  %v835_v60 = vand.u32 4294901760, %v9576_v54  ;;  %v173_v50 = vmul.f32 %v9614_v36, %v9614_v36  ;;  %v9622_v51 = vadd.f32 %v141_v29, %v140_v11 }
  0x6e   :  { %v153_v53 = vrot.slane %v152_v41, 2  ;;  %v166_v55 = vadd.f32 %v165_v43, %v164_v40  ;;  %v188_v56 = vsel %vm187_vm2, %v172_v22, %v171_v19  ;;  %v147_v57 = vadd.f32 %v146_v47, %v145_v37 }
  0x6f   :  { %v384_v4 = vsub.f32 %v9570_v52, %v383_v59  ;;  %v836_v5 = vsub.f32 %v9576_v54, %v835_v60  ;;  %v160_v58 = vrot.slane %v159_v49, 2  ;;  %vm189_vm3 = vcmask 1042434  }
  0x70   :  { %v154_v61 = vadd.f32 %v153_v53, %v152_v41  ;;  %v167_v62 = vrot.slane %v166_v55, 2  ;;  %v174_v1 = vmul.f32 %v9622_v51, %v9622_v51  ;;  %v190_v6 = vsel %vm189_vm3, %v173_v50, %v188_v56 }
  0x71   :  { %v385_v15 = vand.u32 4294901760, %v384_v4  ;;  %v837_v16 = vand.u32 4294901760, %v836_v5  ;;  %v148_v4 = vrot.slane %v147_v57, 1  ;;  %v161_v5 = vadd.f32 %v160_v58, %v159_v49 }
  0x72   :  { %vm191_vm4 = vcmask 1043459   ;;  %vm193_vm5 = vcmask 1044484   ;;  %vm195_vm6 = vcmask 1045509   ;;  %vm197_vm7 = vcmask 1046534  }
  0x73   :  { %8508 = vmatmul.mubr.f32.vlgmr.msra.gmra.mrb[0].mxu0 %v385_v15  ;;  %8538 = vmatmul.mubr.f32.vlgmr.msra.gmra.mrb[0].mxu1 %v837_v16  ;;  %v9635_v11 = vadd.f32 %v148_v4, %v147_v57  ;;  %v162_v12 = vrot.slane %v161_v5, 1  ;;  %v192_v15 = vsel %vm191_vm4, %v174_v1, %v190_v6  ;;  %vm199_vm8 = vcmask 1047559  }
  0x74   :  { %8511 = vmatpush3.xpose.msra.mxu0 %v396_v9  ;;  %8541 = vmatpush3.xpose.msra.mxu1 %v848_v10  ;;  %v155_v9 = vrot.slane %v154_v61, 1  ;;  %v168_v10 = vadd.f32 %v167_v62, %v166_v55  ;;  %v1214_v30 = vsel %vm10414_vm0, %v9614_v36, 0  ;;  %v1666_v31 = vsel %vm10414_vm0, %v9622_v51, 0 }
  0x75   :  { %8512 = vmatprep.mubr.msk.f32.mxu0 %vm9394_vm1, %v9393_v3  ;;  %8515 = vmatprep.subr.mxu0 %v9393_v3  ;;  %v9643_v16 = vadd.f32 %v162_v12, %v161_v5  ;;  %v175_v17 = vmul.f32 %v9635_v11, %v9635_v11  ;;  %v1217_v32 = vsel %vm10414_vm0, %v9536_v28, 0  ;;  %v1669_v37 = vsel %vm10414_vm0, %v9560_v46, 0 }
  0x76   :  { %8542 = vmatprep.mubr.msk.f32.mxu1 %vm9394_vm1, %v9393_v3  ;;  %8545 = vmatprep.subr.mxu1 %v9393_v3  ;;  %v9640_v13 = vadd.f32 %v155_v9, %v154_v61  ;;  %v169_v14 = vrot.slane %v168_v10, 1  ;;  %v9682_v38 = vand.u32 4294901760, %v1214_v30  ;;  %v9684_v40 = vand.u32 4294901760, %v1666_v31 }
  0x77   :  { %v177_v20 = vmul.f32 %v9643_v16, %v9643_v16  ;;  %v194_v21 = vsel %vm193_vm5, %v175_v17, %v192_v15  ;;  %v9690_v28 = vand.u32 4294901760, %v1217_v32  ;;  %v9692_v41 = vand.u32 4294901760, %v1669_v37 }
  0x78   :  { %v9647_v18 = vadd.f32 %v169_v14, %v168_v10  ;;  %v176_v19 = vmul.f32 %v9640_v13, %v9640_v13  ;;  %v2121_v55 = vsel %vm10414_vm0, %v9549_v39, 0  ;;  %v2573_v56 = vsel %vm10414_vm0, %v9562_v48, 0 }
  0x79   :  { %v9758_v61 = vand.u32 4294901760, %v2121_v55  ;;  %v9760_v62 = vand.u32 4294901760, %v2573_v56 }
  0x7a   :  { %v178_v22 = vmul.f32 %v9647_v18, %v9647_v18  ;;  %v196_v23 = vsel %vm195_vm6, %v176_v19, %v194_v21 }
  0x7b   :  { %8513 = vmatmul.mubr.f32.vlgmr.msra.gmra.mrb[0].mxu0 %v9556_v44  ;;  %8543 = vmatmul.mubr.f32.vlgmr.msra.gmra.mrb[0].mxu1 %v9558_v45  ;;  %v198_v26 = vsel %vm197_vm7, %v177_v20, %v196_v23  ;;  %v2201_v1 = vsub.f32 %v2121_v55, %v9758_v61  ;;  %v2653_v4 = vsub.f32 %v2573_v56, %v9760_v62  ;;  %v3022_v23 = vsel %vm10414_vm0, %v9643_v16, 0 }
  0x7c   :  { %8516 = vmatpush3.xpose.msra.mxu0 %v9531_v24  ;;  %8546 = vmatpush3.xpose.msra.mxu1 %v9534_v25  ;;  %v200_v27 = vsel %vm199_vm8, %v178_v22, %v198_v26  ;;  %v1286_v24 = vsub.f32 %v1214_v30, %v9682_v38  ;;  %v1297_v25 = vsub.f32 %v1217_v32, %v9690_v28  ;;  %v3474_v26 = vsel %vm10414_vm0, %v9647_v18, 0 }
  0x7d   :  { %8517 = vmatprep.mubr.msk.f32.mxu0 %vm9394_vm1, %v9393_v3  ;;  %8520 = vmatprep.subr.mxu0 %v9393_v3  ;;  %v202_v29 = vsel %vm10414_vm0, %v200_v27, 0.0  ;;  %v2202_v9 = vand.u32 4294901760, %v2201_v1  ;;  %v2654_v10 = vand.u32 4294901760, %v2653_v4  ;;  %v3025_v27 = vsel %vm10414_vm0, %v9587_v63, 0 }
  0x7e   :  { %8547 = vmatprep.mubr.msk.f32.mxu1 %vm9394_vm1, %v9393_v3  ;;  %8550 = vmatprep.subr.mxu1 %v9393_v3  ;;  %v1287_v46 = vand.u32 4294901760, %v1286_v24  ;;  %v9822_v30 = vand.u32 4294901760, %v3022_v23  ;;  %v9826_v32 = vand.u32 4294901760, %v3025_v27  ;;  %v3933_v55 = vlaneseq }
  0x7f   :  { %203 = vadd.xlane.f32.xlu0 %v202_v29  ;;  %v2203_v15 = vsub.f32 %v2201_v1, %v2202_v9  ;;  %v2655_v17 = vsub.f32 %v2653_v4, %v2654_v10  ;;  %v3477_v29 = vsel %vm10414_vm0, %v9590_v2, 0 }
  0x80   :  { %v3094_v63 = vsub.f32 %v3022_v23, %v9822_v30 }
  0x81   :  { %v2204_v21 = vand.u32 4294901760, %v2203_v15  ;;  %v2656_v22 = vand.u32 4294901760, %v2655_v17 }
  0x83   :  { %8518 = vmatmul.mubr.f32.vlgmr.msra.gmra.mrb[0].mxu0 %v9570_v52  ;;  %8548 = vmatmul.mubr.f32.vlgmr.msra.gmra.mrb[0].mxu1 %v9576_v54  ;;  %v1298_v54 = vand.u32 4294901760, %v1297_v25 }
  0x84   :  { %8521 = vmatpush3.xpose.msra.mxu0 %v9514_v7  ;;  %8551 = vmatpush3.xpose.msra.mxu1 %v9516_v8 }
  0x85   :  { %8522 = vmatprep.mubr.msk.f32.mxu0 %vm9394_vm1, %v9393_v3  ;;  %8525 = vmatprep.subr.mxu0 %v9393_v3  ;;  %v1299_v47 = vsub.f32 %v1297_v25, %v1298_v54 }
  0x86   :  { %8552 = vmatprep.mubr.msk.f32.mxu1 %vm9394_vm1, %v9393_v3  ;;  %8555 = vmatprep.subr.mxu1 %v9393_v3 }
  0x87   :  { %v1300_v50 = vand.u32 4294901760, %v1299_v47  ;;  %v9899_v47 = vand.u32 4294901760, %v9507_v0 }
  0x8b   :  { %8523 = vmatmul.mubr.f32.vlgmr.msra.gmra.mrb[0].mxu0 %v383_v59  ;;  %8553 = vmatmul.mubr.f32.vlgmr.msra.gmra.mrb[0].mxu1 %v835_v60  ;;  %v1288_v60 = vsub.f32 %v1286_v24, %v1287_v46 }
  0x8c   :  { %8526 = vmatpush3.xpose.msra.mxu0 %v394_v35  ;;  %8556 = vmatpush3.xpose.msra.mxu1 %v846_v42  ;;  %v1738_v35 = vsub.f32 %v1666_v31, %v9684_v40  ;;  %v1749_v42 = vsub.f32 %v1669_v37, %v9692_v41  ;;  %v9824_v31 = vand.u32 4294901760, %v3474_v26  ;;  %v9828_v37 = vand.u32 4294901760, %v3477_v29 }
  0x8d   :  { %8527 = vmatprep.mubr.msk.f32.mxu0 %vm9394_vm1, %v9393_v3  ;;  %8530 = vmatprep.subr.mxu0 %v9393_v3 }
  0x8e   :  { %8557 = vmatprep.mubr.msk.f32.mxu1 %vm9394_vm1, %v9393_v3  ;;  %8560 = vmatprep.subr.mxu1 %v9393_v3  ;;  %v1739_v52 = vand.u32 4294901760, %v1738_v35  ;;  %v1750_v59 = vand.u32 4294901760, %v1749_v42  ;;  %v3546_v2 = vsub.f32 %v3474_v26, %v9824_v31 }
  0x90   :  { %v1740_v43 = vsub.f32 %v1738_v35, %v1739_v52  ;;  %v1751_v49 = vsub.f32 %v1749_v42, %v1750_v59 }
  0x92   :  { %v1752_v53 = vand.u32 4294901760, %v1751_v49 }
  0x93   :  { %8528 = vmatmul.mubr.f32.vlgmr.msra.gmra.mrb[0].mxu0 %v9556_v44  ;;  %8558 = vmatmul.mubr.f32.vlgmr.msra.gmra.mrb[0].mxu1 %v9558_v45 }
  0x94   :  { %8531 = vmatpush3.xpose.msra.mxu0 %v9514_v7  ;;  %8561 = vmatpush3.xpose.msra.mxu1 %v9516_v8  ;;  %v1289_v7 = vand.u32 4294901760, %v1288_v60  ;;  %v1741_v8 = vand.u32 4294901760, %v1740_v43 }
  0x95   :  { %8532 = vmatprep.mubr.msk.f32.mxu0 %vm9394_vm1, %v9393_v3  ;;  %8562 = vmatprep.mubr.msk.f32.mxu1 %vm9394_vm1, %v9393_v3 }
  0x96   :  { %8565 = vmatprep.subr.mxu0 %v9393_v3  ;;  %8595 = vmatprep.subr.mxu1 %v9393_v3 }
  0x9b   :  { %8533 = vmatmul.mubr.f32.vlgmr.msra.gmra.mrb[0].mxu0 %v9556_v44  ;;  %8563 = vmatmul.mubr.f32.vlgmr.msra.gmra.mrb[0].mxu1 %v9558_v45  ;;  %v2118_v44 = vsel %vm10414_vm0, %v9635_v11, 0  ;;  %v2570_v45 = vsel %vm10414_vm0, %v9640_v13, 0 }
  0x9c   :  { %8566 = vmatpush3.xpose.msra.mxu0 %v9690_v28  ;;  %8596 = vmatpush3.xpose.msra.mxu1 %v9692_v41  ;;  %v9754_v57 = vand.u32 4294901760, %v2118_v44  ;;  %v9756_v58 = vand.u32 4294901760, %v2570_v45 }
  0x9d   :  { %8567 = vmatprep.mubr.msk.f32.mxu0 %vm9394_vm1, %v9393_v3  ;;  %8570 = vmatprep.subr.mxu0 %v9393_v3 }
  0x9e   :  { %8597 = vmatprep.mubr.msk.f32.mxu1 %vm9394_vm1, %v9393_v3  ;;  %8600 = vmatprep.subr.mxu1 %v9393_v3  ;;  %v2190_v39 = vsub.f32 %v2118_v44, %v9754_v57  ;;  %v2642_v48 = vsub.f32 %v2570_v45, %v9756_v58 }
  0x9f   :  { %8568 = vmatmul.mubr.f32.vlgmr.msra.gmra.mrb[2].mxu0 %v1289_v7  ;;  %8598 = vmatmul.mubr.f32.vlgmr.msra.gmra.mrb[2].mxu1 %v1741_v8 }
  0xa0   :  { %8571 = vmatpush3.xpose.msra.mxu0 %v1300_v50  ;;  %8601 = vmatpush3.xpose.msra.mxu1 %v1752_v53  ;;  %v2191_v5 = vand.u32 4294901760, %v2190_v39  ;;  %v2643_v6 = vand.u32 4294901760, %v2642_v48 }
  0xa1   :  { %8572 = vmatprep.mubr.msk.f32.mxu0 %vm9394_vm1, %v9393_v3  ;;  %8575 = vmatprep.subr.mxu0 %v9393_v3 }
  0xa2   :  { %8602 = vmatprep.mubr.msk.f32.mxu1 %vm9394_vm1, %v9393_v3  ;;  %8605 = vmatprep.subr.mxu1 %v9393_v3  ;;  %v2192_v12 = vsub.f32 %v2190_v39, %v2191_v5  ;;  %v2644_v14 = vsub.f32 %v2642_v48, %v2643_v6 }
  0xa4   :  { %v2193_v19 = vand.u32 4294901760, %v2192_v12  ;;  %v2645_v20 = vand.u32 4294901760, %v2644_v14 }
  0xa7   :  { %8573 = vmatmul.mubr.f32.vlgmr.msra.gmra.mrb[2].mxu0 %v9682_v38  ;;  %8603 = vmatmul.mubr.f32.vlgmr.msra.gmra.mrb[2].mxu1 %v9684_v40 }
  0xa8   :  { %8576 = vmatpush3.xpose.msra.mxu0 %v1297_v25  ;;  %8606 = vmatpush3.xpose.msra.mxu1 %v1749_v42 }
  0xa9   :  { %8577 = vmatprep.mubr.msk.f32.mxu0 %vm9394_vm1, %v9393_v3  ;;  %8580 = vmatprep.subr.mxu0 %v9393_v3 }
  0xaa   :  { %8607 = vmatprep.mubr.msk.f32.mxu1 %vm9394_vm1, %v9393_v3  ;;  %8610 = vmatprep.subr.mxu1 %v9393_v3 }
  0xaf   :  { %8578 = vmatmul.mubr.f32.vlgmr.msra.gmra.mrb[2].mxu0 %v1286_v24  ;;  %8608 = vmatmul.mubr.f32.vlgmr.msra.gmra.mrb[2].mxu1 %v1738_v35 }
  0xb0   :  { %8581 = vmatpush3.xpose.msra.mxu0 %v9690_v28  ;;  %8611 = vmatpush3.xpose.msra.mxu1 %v9692_v41 }
  0xb1   :  { %8582 = vmatprep.mubr.msk.f32.mxu0 %vm9394_vm1, %v9393_v3  ;;  %8585 = vmatprep.subr.mxu0 %v9393_v3 }
  0xb2   :  { %8612 = vmatprep.mubr.msk.f32.mxu1 %vm9394_vm1, %v9393_v3  ;;  %8615 = vmatprep.subr.mxu1 %v9393_v3 }
  0xb7   :  { %8583 = vmatmul.mubr.f32.vlgmr.msra.gmra.mrb[2].mxu0 %v1287_v46  ;;  %8613 = vmatmul.mubr.f32.vlgmr.msra.gmra.mrb[2].mxu1 %v1739_v52 }
  0xb8   :  { %8586 = vmatpush3.xpose.msra.mxu0 %v1298_v54  ;;  %8616 = vmatpush3.xpose.msra.mxu1 %v1750_v59 }
  0xb9   :  { %8587 = vmatprep.mubr.msk.f32.mxu0 %vm9394_vm1, %v9393_v3  ;;  %8590 = vmatprep.subr.mxu0 %v9393_v3 }
  0xba   :  { %8617 = vmatprep.mubr.msk.f32.mxu1 %vm9394_vm1, %v9393_v3  ;;  %8620 = vmatprep.subr.mxu1 %v9393_v3 }
  0xbf   :  { %8588 = vmatmul.mubr.f32.vlgmr.msra.gmra.mrb[2].mxu0 %v9682_v38  ;;  %8618 = vmatmul.mubr.f32.vlgmr.msra.gmra.mrb[2].mxu1 %v9684_v40 }
  0xc0   :  { %8591 = vmatpush3.xpose.msra.mxu0 %v9690_v28  ;;  %8621 = vmatpush3.xpose.msra.mxu1 %v9692_v41  ;;  %v3095_v28 = vand.u32 4294901760, %v3094_v63  ;;  %v3547_v41 = vand.u32 4294901760, %v3546_v2 }
  0xc1   :  { %8592 = vmatprep.mubr.msk.f32.mxu0 %vm9394_vm1, %v9393_v3  ;;  %8622 = vmatprep.mubr.msk.f32.mxu1 %vm9394_vm1, %v9393_v3 }
  0xc2   :  { %8625 = vmatprep.subr.mxu0 %v9393_v3  ;;  %8655 = vmatprep.subr.mxu1 %v9393_v3  ;;  %v3096_v25 = vsub.f32 %v3094_v63, %v3095_v28  ;;  %v3548_v42 = vsub.f32 %v3546_v2, %v3547_v41 }
  0xc4   :  { %v3097_v54 = vand.u32 4294901760, %v3096_v25  ;;  %v3549_v59 = vand.u32 4294901760, %v3548_v42 }
  0xc7   :  { %8593 = vmatmul.mubr.f32.vlgmr.msra.gmra.mrb[2].mxu0 %v9682_v38  ;;  %8623 = vmatmul.mubr.f32.vlgmr.msra.gmra.mrb[2].mxu1 %v9684_v40  ;;  %v3105_v38 = vsub.f32 %v3025_v27, %v9826_v32  ;;  %v3557_v40 = vsub.f32 %v3477_v29, %v9828_v37 }
  0xc8   :  { %8626 = vmatpush3.xpose.msra.mxu0 %v9758_v61  ;;  %8656 = vmatpush3.xpose.msra.mxu1 %v9760_v62 }
  0xc9   :  { %8627 = vmatprep.mubr.msk.f32.mxu0 %vm9394_vm1, %v9393_v3  ;;  %8630 = vmatprep.subr.mxu0 %v9393_v3  ;;  %v3106_v24 = vand.u32 4294901760, %v3105_v38  ;;  %v3558_v35 = vand.u32 4294901760, %v3557_v40 }
  0xca   :  { %8657 = vmatprep.mubr.msk.f32.mxu1 %vm9394_vm1, %v9393_v3  ;;  %8660 = vmatprep.subr.mxu1 %v9393_v3 }
  0xcb   :  { %8628 = vmatmul.mubr.f32.vlgmr.msra.gmra.mrb[4].mxu0 %v2193_v19  ;;  %8658 = vmatmul.mubr.f32.vlgmr.msra.gmra.mrb[4].mxu1 %v2645_v20  ;;  %v3107_v46 = vsub.f32 %v3105_v38, %v3106_v24  ;;  %v3559_v52 = vsub.f32 %v3557_v40, %v3558_v35 }
  0xcc   :  { %8631 = vmatpush3.xpose.msra.mxu0 %v2204_v21  ;;  %8661 = vmatpush3.xpose.msra.mxu1 %v2656_v22 }
  0xcd   :  { %8632 = vmatprep.mubr.msk.f32.mxu0 %vm9394_vm1, %v9393_v3  ;;  %8635 = vmatprep.subr.mxu0 %v9393_v3  ;;  %v3108_v60 = vand.u32 4294901760, %v3107_v46  ;;  %v3560_v43 = vand.u32 4294901760, %v3559_v52 }
  0xce   :  { %8662 = vmatprep.mubr.msk.f32.mxu1 %vm9394_vm1, %v9393_v3  ;;  %8665 = vmatprep.subr.mxu1 %v9393_v3 }
  0xd3   :  { %8633 = vmatmul.mubr.f32.vlgmr.msra.gmra.mrb[4].mxu0 %v9754_v57  ;;  %8663 = vmatmul.mubr.f32.vlgmr.msra.gmra.mrb[4].mxu1 %v9756_v58 }
  0xd4   :  { %8636 = vmatpush3.xpose.msra.mxu0 %v2201_v1  ;;  %8666 = vmatpush3.xpose.msra.mxu1 %v2653_v4 }
  0xd5   :  { %8637 = vmatprep.mubr.msk.f32.mxu0 %vm9394_vm1, %v9393_v3  ;;  %8640 = vmatprep.subr.mxu0 %v9393_v3 }
  0xd6   :  { %8667 = vmatprep.mubr.msk.f32.mxu1 %vm9394_vm1, %v9393_v3  ;;  %8670 = vmatprep.subr.mxu1 %v9393_v3 }
  0xdb   :  { %8638 = vmatmul.mubr.f32.vlgmr.msra.gmra.mrb[4].mxu0 %v2190_v39  ;;  %8668 = vmatmul.mubr.f32.vlgmr.msra.gmra.mrb[4].mxu1 %v2642_v48  ;;  %v9917_v39 = vshrl.u32 %v3933_v55, 7 }
  0xdc   :  { %8641 = vmatpush3.xpose.msra.mxu0 %v9758_v61  ;;  %8671 = vmatpush3.xpose.msra.mxu1 %v9760_v62 }
  0xdd   :  { %8642 = vmatprep.mubr.msk.f32.mxu0 %vm9394_vm1, %v9393_v3  ;;  %8645 = vmatprep.subr.mxu0 %v9393_v3 }
  0xde   :  { %8672 = vmatprep.mubr.msk.f32.mxu1 %vm9394_vm1, %v9393_v3  ;;  %8675 = vmatprep.subr.mxu1 %v9393_v3 }
  0xe3   :  { %8643 = vmatmul.mubr.f32.vlgmr.msra.gmra.mrb[4].mxu0 %v2191_v5  ;;  %8673 = vmatmul.mubr.f32.vlgmr.msra.gmra.mrb[4].mxu1 %v2643_v6 }
  0xe4   :  { %8646 = vmatpush3.xpose.msra.mxu0 %v2202_v9  ;;  %8676 = vmatpush3.xpose.msra.mxu1 %v2654_v10 }
  0xe5   :  { %8647 = vmatprep.mubr.msk.f32.mxu0 %vm9394_vm1, %v9393_v3  ;;  %8650 = vmatprep.subr.mxu0 %v9393_v3 }
  0xe6   :  { %8677 = vmatprep.mubr.msk.f32.mxu1 %vm9394_vm1, %v9393_v3  ;;  %8680 = vmatprep.subr.mxu1 %v9393_v3 }
  0xeb   :  { %8648 = vmatmul.mubr.f32.vlgmr.msra.gmra.mrb[4].mxu0 %v9754_v57  ;;  %8678 = vmatmul.mubr.f32.vlgmr.msra.gmra.mrb[4].mxu1 %v9756_v58 }
  0xec   :  { %8651 = vmatpush3.xpose.msra.mxu0 %v9758_v61  ;;  %8681 = vmatpush3.xpose.msra.mxu1 %v9760_v62  ;;  %v223_v49 = vpop.xlane.xlu0 %222  ;;  %v3934_v62 = vand.u32 127, %v3933_v55 }
  0xed   :  { %8652 = vmatprep.mubr.msk.f32.mxu0 %vm9394_vm1, %v9393_v3  ;;  %8682 = vmatprep.mubr.msk.f32.mxu1 %vm9394_vm1, %v9393_v3  ;;  %v229_v7 = vpop.xlane.xlu1 %228  ;;  %9192 = vrsqrt.f32 %v223_v49  ;;  %vm247_vm9 = vcmp.eq.f32.partialorder %v223_v49, inf  ;;  %vm249_vm11 = vcmp.eq.f32.partialorder %v223_v49, 0.0  ;;  %v250_v4 = vand.u32 2147483648, %v223_v49 }
  0xee   :  { %8685 = vmatprep.subr.mxu0 %v9393_v3  ;;  %8715 = vmatprep.subr.mxu1 %v9393_v3  ;;  %vm261_vm12 = vcmp.eq.f32.partialorder %v229_v7, inf  ;;  %vm263_vm14 = vcmp.eq.f32.partialorder %v229_v7, 0.0  ;;  %v264_v14 = vand.u32 2147483648, %v229_v7  ;;  %v3937_v21 = vsub.s32 %v3934_v62, %v9917_v39 }
  0xf0   :  { %v226_v8 = vpop.xlane.xlu0 %225 }
  0xf1   :  { %9194 = vrsqrt.f32 %v226_v8  ;;  %v232_v0 = vpop.xlane.xlu1 %231  ;;  %vm254_vm10 = vcmp.eq.f32.partialorder %v226_v8, inf  ;;  %v257_v6 = vand.u32 2147483648, %v226_v8  ;;  %vm256_vm13 = vcmp.eq.f32.partialorder %v226_v8, 0.0 }
  0xf2   :  { %9196 = vrsqrt.f32 %v229_v7  ;;  %vm268_vm15 = vcmp.eq.f32.partialorder %v232_v0, inf  ;;  %vm270_vm0 = vcmp.eq.f32.partialorder %v232_v0, 0.0  ;;  %v271_v23 = vand.u32 2147483648, %v232_v0 }
  0xf3   :  { %8653 = vmatmul.mubr.f32.vlgmr.msra.gmra.mrb[4].mxu0 %v9754_v57  ;;  %8683 = vmatmul.mubr.f32.vlgmr.msra.gmra.mrb[4].mxu1 %v9756_v58  ;;  %9198 = vrsqrt.f32 %v232_v0 }
  0xf4   :  { %8686 = vmatpush3.xpose.msra.mxu0 %v9826_v32  ;;  %8716 = vmatpush3.xpose.msra.mxu1 %v9828_v37  ;;  %v9909_v50 = vpop.xlane.xlu0 %234 }
  0xf5   :  { %8687 = vmatprep.mubr.msk.f32.mxu0 %vm9394_vm1, %v9393_v3  ;;  %8690 = vmatprep.subr.mxu0 %v9393_v3  ;;  %9200 = vrsqrt.f32 %v9909_v50  ;;  %v9912_v44 = vpop.xlane.xlu1 %237 }
  0xf6   :  { %8717 = vmatprep.mubr.msk.f32.mxu1 %vm9394_vm1, %v9393_v3  ;;  %8720 = vmatprep.subr.mxu1 %v9393_v3  ;;  %9202 = vrsqrt.f32 %v9912_v44  ;;  %v285_v25 = vand.u32 2147483648, %v9912_v44 }
  0xf7   :  { %8688 = vmatmul.mubr.f32.vlgmr.msra.gmra.mrb[6].mxu0 %v3097_v54  ;;  %8718 = vmatmul.mubr.f32.vlgmr.msra.gmra.mrb[6].mxu1 %v3549_v59  ;;  %v9193_v53 = vpop.eup %9192 }
  0xf8   :  { %8691 = vmatpush3.xpose.msra.mxu0 %v3108_v60  ;;  %8721 = vmatpush3.xpose.msra.mxu1 %v3560_v43  ;;  %v9915_v56 = vpop.xlane.xlu0 %240  ;;  %v246_v58 = vmul.f32 %v9193_v53, %v223_v49 }
  0xf9   :  { %8692 = vmatprep.mubr.msk.f32.mxu0 %vm9394_vm1, %v9393_v3  ;;  %8695 = vmatprep.subr.mxu0 %v9393_v3  ;;  %9204 = vrsqrt.f32 %v9915_v56  ;;  %v9920_v48 = vpop.xlane.xlu1 %243  ;;  %v292_v43 = vand.u32 2147483648, %v9915_v56 }
  0xfa   :  { %8722 = vmatprep.mubr.msk.f32.mxu1 %vm9394_vm1, %v9393_v3  ;;  %8725 = vmatprep.subr.mxu1 %v9393_v3  ;;  %v248_v9 = vsel %vm247_vm9, %v223_v49, %v246_v58  ;;  %9206 = vrsqrt.f32 %v9920_v48  ;;  %vm275_vm9 = vcmp.eq.f32.partialorder %v9909_v50, inf }
  0xfb   :  { %v9195_v45 = vpop.eup %9194  ;;  %v251_v17 = vsel %vm249_vm11, %v250_v4, %v248_v9  ;;  %vm282_vm11 = vcmp.eq.f32.partialorder %v9912_v44, inf }
  0xfc   :  { %v9197_v57 = vpop.eup %9196  ;;  %v253_v61 = vmul.f32 %v9195_v45, %v226_v8  ;;  %v301_v29 = vmax.f32 %v251_v17, 1e-12 }
  0xfd   :  { %v9199_v1 = vpop.eup %9198  ;;  %v260_v5 = vmul.f32 %v9197_v57, %v229_v7 }
  0xfe   :  { %v255_v10 = vsel %vm254_vm10, %v226_v8, %v253_v61  ;;  %v267_v15 = vmul.f32 %v9199_v1, %v232_v0  ;;  %vm277_vm10 = vcmp.eq.f32.partialorder %v9909_v50, 0.0 }
  0xff   :  { %8693 = vmatmul.mubr.f32.vlgmr.msra.gmra.mrb[6].mxu0 %v9822_v30  ;;  %8723 = vmatmul.mubr.f32.vlgmr.msra.gmra.mrb[6].mxu1 %v9824_v31  ;;  %v9201_v12 = vpop.eup %9200  ;;  %v262_v19 = vsel %vm261_vm12, %v229_v7, %v260_v5  ;;  %v258_v20 = vsel %vm256_vm13, %v257_v6, %v255_v10  ;;  %vm284_vm12 = vcmp.eq.f32.partialorder %v9912_v44, 0.0  ;;  %vm289_vm13 = vcmp.eq.f32.partialorder %v9915_v56, inf }
 0x100   :  { %8696 = vmatpush3.xpose.msra.mxu0 %v3105_v38  ;;  %8726 = vmatpush3.xpose.msra.mxu1 %v3557_v40  ;;  %v9203_v22 = vpop.eup %9202  ;;  %v274_v26 = vmul.f32 %v9201_v12, %v9909_v50 }
 0x101   :  { %8697 = vmatprep.mubr.msk.f32.mxu0 %vm9394_vm1, %v9393_v3  ;;  %8700 = vmatprep.subr.mxu0 %v9393_v3 }
 0x102   :  { %8727 = vmatprep.mubr.msk.f32.mxu1 %vm9394_vm1, %v9393_v3  ;;  %8730 = vmatprep.subr.mxu1 %v9393_v3 }
 0x107   :  { %8698 = vmatmul.mubr.f32.vlgmr.msra.gmra.mrb[6].mxu0 %v3094_v63  ;;  %8728 = vmatmul.mubr.f32.vlgmr.msra.gmra.mrb[6].mxu1 %v3546_v2  ;;  %v278_v63 = vand.u32 2147483648, %v9909_v50  ;;  %v281_v2 = vmul.f32 %v9203_v22, %v9912_v44 }
 0x108   :  { %8701 = vmatpush3.xpose.msra.mxu0 %v9826_v32  ;;  %8731 = vmatpush3.xpose.msra.mxu1 %v9828_v37 }
 0x109   :  { %8702 = vmatprep.mubr.msk.f32.mxu0 %vm9394_vm1, %v9393_v3  ;;  %8705 = vmatprep.subr.mxu0 %v9393_v3  ;;  %v283_v54 = vsel %vm282_vm11, %v9912_v44, %v281_v2  ;;  %v299_v44 = vand.u32 2147483648, %v9920_v48 }
 0x10a   :  { %8732 = vmatprep.mubr.msk.f32.mxu1 %vm9394_vm1, %v9393_v3  ;;  %8735 = vmatprep.subr.mxu1 %v9393_v3  ;;  %v286_v8 = vsel %vm284_vm12, %v285_v25, %v283_v54  ;;  %vm4052_vm12 = vcmask 64512  }
 0x10b   :  { %v306_v55 = vmax.f32 %v286_v8, 1e-12 }
 0x10c   :  { %v204_v27 = vpop.xlane.xlu0 %203 }
 0x10d   :  { %9208 = vrsqrt.f32 %v204_v27  ;;  %v3958_v5 = vrot.slane %v306_v55, %v3937_v21  ;;  %v210_v10 = vand.u32 2147483648, %v204_v27 }
 0x10f   :  { %8703 = vmatmul.mubr.f32.vlgmr.msra.gmra.mrb[6].mxu0 %v3095_v28  ;;  %8733 = vmatmul.mubr.f32.vlgmr.msra.gmra.mrb[6].mxu1 %v3547_v41  ;;  %v276_v28 = vsel %vm275_vm9, %v9909_v50, %v274_v26  ;;  %v3938_v41 = vrot.slane %v301_v29, %v3937_v21  ;;  %vm207_vm9 = vcmp.eq.f32.partialorder %v204_v27, inf }
 0x110   :  { %8706 = vmatpush3.xpose.msra.mxu0 %v3106_v24  ;;  %8736 = vmatpush3.xpose.msra.mxu1 %v3558_v35  ;;  %v279_v52 = vsel %vm277_vm10, %v278_v63, %v276_v28  ;;  %vm209_vm10 = vcmp.eq.f32.partialorder %v204_v27, 0.0 }
 0x111   :  { %8707 = vmatprep.mubr.msk.f32.mxu0 %vm9394_vm1, %v9393_v3  ;;  %8710 = vmatprep.subr.mxu0 %v9393_v3  ;;  %v305_v7 = vmax.f32 %v279_v52, 1e-12 }
 0x112   :  { %8737 = vmatprep.mubr.msk.f32.mxu1 %vm9394_vm1, %v9393_v3  ;;  %8740 = vmatprep.subr.mxu1 %v9393_v3 }
 0x113   :  { %v3954_v61 = vrot.slane %v305_v7, %v3937_v21 }
 0x117   :  { %8708 = vmatmul.mubr.f32.vlgmr.msra.gmra.mrb[6].mxu0 %v9822_v30  ;;  %8738 = vmatmul.mubr.f32.vlgmr.msra.gmra.mrb[6].mxu1 %v9824_v31 }
 0x118   :  { %8711 = vmatpush3.xpose.msra.mxu0 %v9826_v32  ;;  %8741 = vmatpush3.xpose.msra.mxu1 %v9828_v37  ;;  %v269_v32 = vsel %vm268_vm15, %v232_v0, %v267_v15  ;;  %v9205_v37 = vpop.eup %9204  ;;  %vm298_vm15 = vcmp.eq.f32.partialorder %v9920_v48, 0.0 }
 0x119   :  { %8712 = vmatprep.mubr.msk.f32.mxu0 %vm9394_vm1, %v9393_v3  ;;  %8742 = vmatprep.mubr.msk.f32.mxu1 %vm9394_vm1, %v9393_v3  ;;  %v272_v40 = vsel %vm270_vm0, %v271_v23, %v269_v32  ;;  %v9207_v35 = vpop.eup %9206  ;;  %v288_v42 = vmul.f32 %v9205_v37, %v9915_v56  ;;  %vm291_vm0 = vcmp.eq.f32.partialorder %v9915_v56, 0.0  ;;  %v4013_v32 = vstv %s8281_s3 }
 0x11a   :  { %8750 = vmatprep.subr.mxu1 %v9393_v3  ;;  %8745 = vmatprep.subr.mxu0 %v9393_v3  ;;  %v304_v46 = vmax.f32 %v272_v40, 1e-12  ;;  %v295_v49 = vmul.f32 %v9207_v35, %v9920_v48  ;;  %v9209_v45 = vpop.eup %9208 }
 0x11b   :  { %v290_v0 = vsel %vm289_vm13, %v9915_v56, %v288_v42  ;;  %v206_v56 = vmul.f32 %v9209_v45, %v204_v27 }
 0x11c   :  { %v3950_v50 = vrot.slane %v304_v46, %v3937_v21  ;;  %v293_v57 = vsel %vm291_vm0, %v292_v43, %v290_v0 }
 0x11d   :  { %v307_v1 = vmax.f32 %v293_v57, 1e-12 }
 0x11f   :  { %8713 = vmatmul.mubr.f32.vlgmr.msra.gmra.mrb[6].mxu0 %v9822_v30  ;;  %8743 = vmatmul.mubr.f32.vlgmr.msra.gmra.mrb[6].mxu1 %v9824_v31  ;;  %v265_v30 = vsel %vm263_vm14, %v264_v14, %v262_v19  ;;  %v302_v31 = vmax.f32 %v258_v20, 1e-12  ;;  %vm296_vm14 = vcmp.eq.f32.partialorder %v9920_v48, inf  ;;  %v3962_v12 = vrot.slane %v307_v1, %v3937_v21 }
 0x120   :  { %8752 = vmatprep.mubr.msk.f32.mxu1 %vm9394_vm1, %v9393_v3  ;;  %8746 = vmatpush3.msra.mxu0 %v9899_v47  ;;  %v303_v38 = vmax.f32 %v265_v30, 1e-12  ;;  %v297_v58 = vsel %vm296_vm14, %v9920_v48, %v295_v49  ;;  %v208_v14 = vsel %vm207_vm9, %v204_v27, %v206_v56 }
 0x121   :  { %8747 = vmatprep.mubr.msk.f32.mxu0 %vm9394_vm1, %v9393_v3  ;;  %8755 = vmatprep.subr.mxu0 %v9393_v3  ;;  %v3942_v24 = vrot.slane %v302_v31, %v3937_v21  ;;  %v300_v4 = vsel %vm298_vm15, %v299_v44, %v297_v58  ;;  %v211_v19 = vsel %vm209_vm10, %v210_v10, %v208_v14 }
 0x122   :  { %v3946_v59 = vrot.slane %v303_v38, %v3937_v21  ;;  %v308_v9 = vmax.f32 %v300_v4, 1e-12  ;;  %v212_v20 = vmax.f32 %v211_v19, 1e-12 }
 0x123   :  { %v3967_v60 = vsel %vm187_vm2, %v3942_v24, %v3938_v41 }
 0x124   :  { %v3968_v53 = vsel %vm189_vm3, %v3946_v59, %v3967_v60  ;;  %v3966_v17 = vrot.slane %v308_v9, %v3937_v21 }
 0x125   :  { %v3969_v62 = vsel %vm191_vm4, %v3950_v50, %v3968_v53 }
 0x126   :  { %v3970_v6 = vsel %vm193_vm5, %v3954_v61, %v3969_v62 }
 0x127   :  { %v3971_v15 = vsel %vm195_vm6, %v3958_v5, %v3970_v6 }
 0x128   :  { %v3972_v48 = vsel %vm197_vm7, %v3962_v12, %v3971_v15 }
 0x129   :  { %v3973_v22 = vsel %vm199_vm8, %v3966_v17, %v3972_v48 }
 0x12a   :  { %v3975_v23 = vmul.f32 %v3973_v22, %v212_v20 }
 0x12c   :  { %v3977_v26 = vrot.slane %v3975_v23, 1  ;;  %9210 = vrcp.f32 %v3975_v23  ;;  %v3978_v24 = vrot.slane %v3975_v23, 2  ;;  %v3979_v35 = vrot.slane %v3975_v23, 3 }
 0x12d   :  { %v3980_v44 = vrot.slane %v3975_v23, 4  ;;  %v3981_v45 = vrot.slane %v3975_v23, 5  ;;  %v3982_v15 = vrot.slane %v3975_v23, 6  ;;  %v3983_v17 = vrot.slane %v3975_v23, 7 }
 0x12e   :  { %9212 = vrcp.f32 %v3977_v26 }
 0x12f   :  { %9214 = vrcp.f32 %v3978_v24  ;;  %v4047_v24 = vstv %s10410_s6 }
 0x130   :  { %9216 = vrcp.f32 %v3979_v35 }
 0x131   :  { %9218 = vrcp.f32 %v3980_v44 }
 0x132   :  { %9220 = vrcp.f32 %v3981_v45  ;;  %v9396_v45 = vmov 1966171168  }
 0x133   :  { %9222 = vrcp.f32 %v3982_v15 }
 0x134   :  { %9224 = vrcp.f32 %v3983_v17 }
 0x136   :  { %v9211_v29 = vpop.eup %9210 }
 0x138   :  { %v9213_v30 = vpop.eup %9212 }
 0x139   :  { %v9215_v25 = vpop.eup %9214 }
 0x13a   :  { %v9217_v42 = vpop.eup %9216 }
 0x13b   :  { %v9219_v55 = vpop.eup %9218 }
 0x13c   :  { %v9221_v57 = vpop.eup %9220 }
 0x13d   :  { %v9223_v19 = vpop.eup %9222 }
 0x13e   :  { %v9225_v48 = vpop.eup %9224 }
 0x16e   :  { %v757_v31 = vpop.f32.mrb[0].mxu0  ;;  %v1209_v37 = vpop.f32.mrb[0].mxu1 }
 0x16f   :  { %v3993_v27 = vmul.f32 %v9211_v29, %v757_v31  ;;  %v3995_v63 = vmul.f32 %v9213_v30, %v1209_v37  ;;  %v8534_v2 = vpop.f32.mrb[1].mxu0  ;;  %v8564_v21 = vpop.f32.mrb[1].mxu1  ;;  %v4008_v37 = vld [vmem:[#allocation10] sm:$0xff] }
 0x171   :  { %v4015_v38 = vmul.f32 %v4013_v32, %v3995_v63  ;;  %v4014_v40 = vmul.f32 %v4013_v32, %v3993_v27  ;;  %v4010_v27 = vstv %s4009_s5 }
 0x173   :  { %v4030_v28 = vrot.slane %v4015_v38, 7 }
 0x175   :  { %v4031_v41 = vsel %vm187_vm2, %v4030_v28, %v4014_v40  ;;  %v4011_v40 = vmul.f32 %v4010_v27, %v4008_v37  ;;  %v4049_v28 = vld [vmem:[#allocation9] sm:$0xff] }
 0x176   :  { %vm4050_vm11 = vcmp.eq.s32.totalorder %v4049_v28, 0 }
 0x19a   :  { %v1661_v46 = vpop.f32.mrb[2].mxu0  ;;  %v2113_v52 = vpop.f32.mrb[2].mxu1 }
 0x19b   :  { %v3997_v54 = vmul.f32 %v9215_v25, %v1661_v46  ;;  %v3999_v59 = vmul.f32 %v9217_v42, %v2113_v52  ;;  %v8594_v60 = vpop.f32.mrb[3].mxu0  ;;  %v8624_v43 = vpop.f32.mrb[3].mxu1 }
 0x19c   :  { %v9246_v43 = vld [vmem:[#allocation7] sm:$0xff] }
 0x19d   :  { %v4016_v49 = vmul.f32 %v4013_v32, %v3997_v54  ;;  %v4017_v7 = vmul.f32 %v4013_v32, %v3999_v59 }
 0x19f   :  { %v4032_v8 = vrot.slane %v4016_v49, 6  ;;  %v4034_v0 = vrot.slane %v4017_v7, 5  ;;  %v9964_v49 = vsub.f32 %v9246_v43, %v9899_v47 }
 0x1a1   :  { %v4033_v50 = vsel %vm189_vm3, %v4032_v8, %v4031_v41  ;;  %v4195_v7 = vand.u32 4294901760, %v9964_v49 }
 0x1a2   :  { %v4035_v53 = vsel %vm191_vm4, %v4034_v0, %v4033_v50  ;;  %v7698_v50 = vld [vmem:[%s10408_s4] sm:$0xff] }
 0x1a3   :  { %v4196_v8 = vsub.f32 %v9964_v49, %v4195_v7 }
 0x1a5   :  { %v4197_v0 = vand.u32 4294901760, %v4196_v8 }
 0x1a7   :  { %8751 = vmatpush3.msra.mxu1 %v4197_v0 }
 0x1a8   :  { %8760 = vmatprep.subr.mxu1 %v9393_v3 }
 0x1c6   :  { %v2565_v58 = vpop.f32.mrb[4].mxu0  ;;  %v3017_v61 = vpop.f32.mrb[4].mxu1 }
 0x1c7   :  { %v4001_v62 = vmul.f32 %v9219_v55, %v2565_v58  ;;  %v4003_v1 = vmul.f32 %v9221_v57, %v3017_v61  ;;  %v8654_v4 = vpop.f32.mrb[5].mxu0  ;;  %v8684_v56 = vpop.f32.mrb[5].mxu1  ;;  %v4067_v55 = vunpack.c.l.s4 %v9396_v45 }
 0x1c9   :  { %v4018_v5 = vmul.f32 %v4013_v32, %v4001_v62  ;;  %v4019_v6 = vmul.f32 %v4013_v32, %v4003_v1  ;;  %v4068_v57 = vunpack.c.0.s8 %v4067_v55  ;;  %v9247_v62 = vld [vmem:[#allocation7 + $0x8] sm:$0xff] }
 0x1ca   :  { %v4565_v1 = vand.u32 4294901760, %v9247_v62 }
 0x1cb   :  { %v4036_v9 = vrot.slane %v4018_v5, 4  ;;  %v4038_v10 = vrot.slane %v4019_v6, 3  ;;  %v9973_v58 = vsub.s32 %v4068_v57, %v9917_v39 }
 0x1cc   :  { %v9979_v5 = vsub.f32 %v9247_v62, %v4565_v1 }
 0x1cd   :  { %v4037_v12 = vsel %vm193_vm5, %v4036_v9, %v4035_v53  ;;  %v9395_v53 = vmov 0  }
 0x1ce   :  { %v4039_v14 = vsel %vm195_vm6, %v4038_v10, %v4037_v12  ;;  %9190 = vset.pattern.permute.xlu1 %v9395_v53  ;;  %9191 = vset.pattern.permute.xlu0 %v9395_v53 }
 0x1f2   :  { %v3469_v20 = vpop.f32.mrb[6].mxu0  ;;  %v3921_v22 = vpop.f32.mrb[6].mxu1 }
 0x1f3   :  { %v4005_v26 = vmul.f32 %v9223_v19, %v3469_v20  ;;  %v4007_v29 = vmul.f32 %v9225_v48, %v3921_v22  ;;  %v8714_v30 = vpop.f32.mrb[7].mxu0  ;;  %v8744_v31 = vpop.f32.mrb[7].mxu1  ;;  %v9248_v19 = vld [vmem:[#allocation7 + $0x10] sm:$0xff] }
 0x1f4   :  { %v9992_v48 = vand.u32 4294901760, %v9248_v19 }
 0x1f5   :  { %v4020_v63 = vmul.f32 %v4013_v32, %v4005_v26  ;;  %v4021_v2 = vmul.f32 %v4013_v32, %v4007_v29 }
 0x1f6   :  { %v10006_v27 = vsub.f32 %v9248_v19, %v9992_v48 }
 0x1f7   :  { %v4040_v21 = vrot.slane %v4020_v63, 2  ;;  %v4042_v38 = vrot.slane %v4021_v2, 1 }
 0x1f8   :  { %v5091_v2 = vand.u32 4294901760, %v10006_v27 }
 0x1f9   :  { %v4041_v23 = vsel %vm197_vm7, %v4040_v21, %v4039_v14  ;;  %v4643_v14 = vand.u32 4294901760, %v9979_v5 }
 0x1fa   :  { %v4043_v41 = vsel %vm199_vm8, %v4042_v38, %v4041_v23  ;;  %v9249_v38 = vld [vmem:[#allocation7 + $0x18] sm:$0xff]  ;;  %v5092_v28 = vsub.f32 %v10006_v27, %v5091_v2 }
 0x1fb   :  { %v4045_v35 = vadd.f32 %v4043_v41, %v4011_v40  ;;  %v4644_v22 = vsub.f32 %v9979_v5, %v4643_v14  ;;  %v10020_v40 = vand.u32 4294901760, %v9249_v38 }
 0x1fd   :  { %v4048_v25 = vadd.f32 %v4047_v24, %v4045_v35  ;;  %v4645_v31 = vand.u32 4294901760, %v4644_v22  ;;  %v5093_v35 = vand.u32 4294901760, %v5092_v28 }
 0x1ff   :  { %v4051_v42 = vsel %vm4050_vm11, -1e+32, %v4048_v25 }
 0x200   :  { %v4053_v46 = vsel %vm4052_vm12, %v4051_v42, -inf }
 0x201   :  { %4054 = vmax.xlane.f32.xlu1 %v4053_v46 }
 0x212   :  { %7701 = vperm.xlu1 %9190, %v7698_v50  }
 0x28e   :  { %v4055_v32 = vpop.xlane.xlu1 %4054 }
 0x28f   :  { %v4056_v52 = vsub.f32 %v4051_v42, %v4055_v32  ;;  %v10036_v42 = vsub.f32 %v9249_v38, %v10020_v40  ;;  %v9253_v38 = vld [vmem:[#allocation7 + $0x38] sm:$0xff] }
 0x291   :  { %v4057_v54 = vmul.f32 1.442695, %v4056_v52  ;;  %v5539_v52 = vand.u32 4294901760, %v10036_v42 }
 0x293   :  { %9226 = vpow2.f32 %v4057_v54 }
 0x29d   :  { %v9227_v59 = vpop.eup %9226 }
 0x29e   :  { %v4059_v60 = vsel %vm4052_vm12, %v9227_v59, 0.0 }
 0x29f   :  { %4060 = vadd.xlane.f32.xlu0 %v4059_v60  ;;  %v9250_v60 = vld [vmem:[#allocation7 + $0x20] sm:$0xff] }
 0x2a0   :  { %v10060_v43 = vand.u32 4294901760, %v9250_v60 }
 0x2a2   :  { %v10078_v50 = vsub.f32 %v9250_v60, %v10060_v43 }
 0x32c   :  { %v4061_v44 = vpop.xlane.xlu0 %4060 }
 0x32d   :  { %9228 = vrcp.f32 %v4061_v44 }
 0x337   :  { %v9229_v61 = vpop.eup %9228 }
 0x338   :  { %v9975_v4 = vmul.f32 %v9229_v61, %v9227_v59  ;;  %v5987_v61 = vand.u32 4294901760, %v10078_v50 }
 0x33a   :  { %v4072_v56 = vrot.slane %v9975_v4, %v9973_v58  ;;  %v4065_v54 = vcombine.high %v9975_v4, %v9975_v4 }
 0x33c   :  { %v4088_v6 = vrot.slane %v4072_v56, %v9973_v58  ;;  %v4080_v9 = vcombine.high %v4072_v56, %v4072_v56  ;;  %v4079_v0 = vrot.slane %v4065_v54, %v9973_v58 }
 0x33e   :  { %v4114_v10 = vsel %vm4052_vm12, %v4088_v6, 0  ;;  %v9984_v12 = vrot.slane %v4080_v9, %v9973_v58  ;;  %v4110_v63 = vcombine.high %v4088_v6, %v4088_v6  ;;  %v10087_v55 = vrot.slane %v4079_v0, %v9973_v58 }
 0x33f   :  { %v4182_v39 = vand.u32 4294901760, %v4114_v10  ;;  %v4081_v9 = vcombine.high %v4079_v0, %v4079_v0 }
 0x340   :  { %v4562_v15 = vsel %vm4052_vm12, %v9984_v12, 0  ;;  %v5010_v21 = vsel %vm4052_vm12, %v4110_v63, 0  ;;  %v4112_v46 = vcombine.high %v9984_v12, %v9984_v12  ;;  %v5906_v62 = vsel %vm4052_vm12, %v10087_v55, 0 }
 0x341   :  { %v4183_v17 = vsub.f32 %v4114_v10, %v4182_v39  ;;  %8753 = vmatmul.mubr.f32.vlgmr.msra.gmra.mrb[8].mxu1 %v4182_v39  ;;  %v9998_v26 = vand.u32 4294901760, %v4562_v15  ;;  %v10026_v41 = vand.u32 4294901760, %v5010_v21  ;;  %v10112_v6 = vand.u32 4294901760, %v5906_v62 }
 0x342   :  { %8761 = vmatpush3.msra.mxu1 %v9899_v47  ;;  %8762 = vmatprep.mubr.msk.f32.mxu1 %vm9394_vm1, %v9393_v3  ;;  %v5458_v59 = vsel %vm4052_vm12, %v4112_v46, 0  ;;  %v4111_v63 = vcombine.high %v10087_v55, %v10087_v55 }
 0x343   :  { %v4184_v20 = vand.u32 4294901760, %v4183_v17  ;;  %8770 = vmatprep.subr.mxu1 %v9393_v3  ;;  %v4631_v37 = vsub.f32 %v4562_v15, %v9998_v26  ;;  %v5079_v25 = vsub.f32 %v5010_v21, %v10026_v41  ;;  %v10067_v8 = vand.u32 4294901760, %v5458_v59 }
 0x344   :  { %v10131_v15 = vrot.slane %v4081_v9, %v9973_v58  ;;  %v6802_v21 = vsel %vm4052_vm12, %v4111_v63, 0 }
 0x345   :  { %8763 = vmatmul.mubr.f32.vlgmr.msra.gmra.mrb[10].mxu1 %v4184_v20  ;;  %v4185_v29 = vsub.f32 %v4183_v17, %v4184_v20  ;;  %v5080_v32 = vand.u32 4294901760, %v5079_v25  ;;  %v5527_v45 = vsub.f32 %v5458_v59, %v10067_v8 }
 0x346   :  { %8771 = vmatpush3.msra.mxu1 %v9899_v47  ;;  %8772 = vmatprep.mubr.msk.f32.mxu1 %vm9394_vm1, %v9393_v3  ;;  %v4632_v47 = vand.u32 4294901760, %v4631_v37  ;;  %v6354_v58 = vsel %vm4052_vm12, %v10131_v15, 0  ;;  %v4113_v46 = vcombine.high %v10131_v15, %v10131_v15 }
 0x347   :  { %v4186_v30 = vand.u32 4294901760, %v4185_v29  ;;  %8780 = vmatprep.subr.mxu1 %v9393_v3  ;;  %v5528_v57 = vand.u32 4294901760, %v5527_v45  ;;  %v10156_v29 = vand.u32 4294901760, %v6354_v58 }
 0x348   :  { %v4633_v23 = vsub.f32 %v4631_v37, %v4632_v47  ;;  %v7250_v54 = vsel %vm4052_vm12, %v4113_v46, 0  ;;  %v10337_v46 = vpop.permute.xlu1 %7701 }
 0x349   :  { %8748 = vmatmul.mubr.f32.vlgmr.msra.gmra.mrb[8].mxu0 %v4186_v30  ;;  %8773 = vmatmul.mubr.f32.vlgmr.msra.gmra.mrb[12].mxu1 %v4182_v39  ;;  %v5529_v56 = vsub.f32 %v5527_v45, %v5528_v57 }
 0x34a   :  { %8756 = vmatpush3.msra.mxu0 %v9964_v49  ;;  %8757 = vmatprep.mubr.msk.f32.mxu0 %vm9394_vm1, %v9393_v3  ;;  %v4634_v24 = vand.u32 4294901760, %v4633_v23  ;;  %v5081_v49 = vsub.f32 %v5079_v25, %v5080_v32 }
 0x34b   :  { %8765 = vmatprep.subr.mxu0 %v9393_v3  ;;  %8781 = vmatpush3.msra.mxu1 %v4645_v31  ;;  %v5530_v12 = vand.u32 4294901760, %v5529_v56 }
 0x34c   :  { %8782 = vmatprep.mubr.msk.f32.mxu1 %vm9394_vm1, %v9393_v3  ;;  %8790 = vmatprep.subr.mxu1 %v9393_v3  ;;  %v5082_v53 = vand.u32 4294901760, %v5081_v49 }
 0x34d   :  { %8758 = vmatmul.mubr.f32.vlgmr.msra.gmra.mrb[10].mxu0 %v4183_v17  ;;  %8783 = vmatmul.mubr.f32.vlgmr.msra.gmra.mrb[14].mxu1 %v9998_v26 }
 0x34e   :  { %8766 = vmatpush3.msra.mxu0 %v4195_v7  ;;  %8767 = vmatprep.mubr.msk.f32.mxu0 %vm9394_vm1, %v9393_v3  ;;  %v5540_v7 = vsub.f32 %v10036_v42, %v5539_v52 }
 0x34f   :  { %8775 = vmatprep.subr.mxu0 %v9393_v3  ;;  %8791 = vmatpush3.msra.mxu1 %v4565_v1 }
 0x350   :  { %8792 = vmatprep.mubr.msk.f32.mxu1 %vm9394_vm1, %v9393_v3  ;;  %8800 = vmatprep.subr.mxu1 %v9393_v3  ;;  %v5541_v44 = vand.u32 4294901760, %v5540_v7 }
 0x351   :  { %8768 = vmatmul.mubr.f32.vlgmr.msra.gmra.mrb[12].mxu0 %v4182_v39  ;;  %8793 = vmatmul.mubr.f32.vlgmr.msra.gmra.mrb[16].mxu1 %v4632_v47 }
 0x352   :  { %8776 = vmatpush3.msra.mxu0 %v4565_v1  ;;  %8777 = vmatprep.mubr.msk.f32.mxu0 %vm9394_vm1, %v9393_v3 }
 0x353   :  { %8785 = vmatprep.subr.mxu0 %v9393_v3  ;;  %8801 = vmatpush3.msra.mxu1 %v4565_v1  ;;  %v9251_v1 = vld [vmem:[#allocation7 + $0x28] sm:$0xff] }
 0x354   :  { %8802 = vmatprep.mubr.msk.f32.mxu1 %vm9394_vm1, %v9393_v3  ;;  %8810 = vmatprep.subr.mxu1 %v9393_v3  ;;  %v10105_v4 = vand.u32 4294901760, %v9251_v1 }
 0x355   :  { %8778 = vmatmul.mubr.f32.vlgmr.msra.gmra.mrb[14].mxu0 %v4634_v24  ;;  %8803 = vmatmul.mubr.f32.vlgmr.msra.gmra.mrb[18].mxu1 %v9998_v26 }
 0x356   :  { %8786 = vmatpush3.msra.mxu0 %v9979_v5  ;;  %8787 = vmatprep.mubr.msk.f32.mxu0 %vm9394_vm1, %v9393_v3  ;;  %v5988_v5 = vsub.f32 %v10078_v50, %v5987_v61  ;;  %v10122_v10 = vsub.f32 %v9251_v1, %v10105_v4  ;;  %v7744_v1 = vld [vmem:[%s10411_s7 + $0x10] sm:$0xff] }
 0x357   :  { %8795 = vmatprep.subr.mxu0 %v9393_v3  ;;  %8811 = vmatpush3.msra.mxu1 %v5093_v35 }
 0x358   :  { %8812 = vmatprep.mubr.msk.f32.mxu1 %vm9394_vm1, %v9393_v3  ;;  %8820 = vmatprep.subr.mxu1 %v9393_v3  ;;  %v5989_v39 = vand.u32 4294901760, %v5988_v5  ;;  %v6435_v19 = vand.u32 4294901760, %v10122_v10 }
 0x359   :  { %8788 = vmatmul.mubr.f32.vlgmr.msra.gmra.mrb[16].mxu0 %v4631_v37  ;;  %8813 = vmatmul.mubr.f32.vlgmr.msra.gmra.mrb[20].mxu1 %v10026_v41 }
 0x35a   :  { %8796 = vmatpush3.msra.mxu0 %v4643_v14  ;;  %8797 = vmatprep.mubr.msk.f32.mxu0 %vm9394_vm1, %v9393_v3  ;;  %v5975_v14 = vsub.f32 %v5906_v62, %v10112_v6  ;;  %v9397_v62 = vmov 0.0|0.0  }
 0x35b   :  { %8805 = vmatprep.subr.mxu0 %v9393_v3  ;;  %8821 = vmatpush3.msra.mxu1 %v9992_v48 }
 0x35c   :  { %8822 = vmatprep.mubr.msk.f32.mxu1 %vm9394_vm1, %v9393_v3  ;;  %8830 = vmatprep.subr.mxu1 %v9393_v3  ;;  %v5976_v17 = vand.u32 4294901760, %v5975_v14 }
 0x35d   :  { %8798 = vmatmul.mubr.f32.vlgmr.msra.gmra.mrb[18].mxu0 %v9998_v26  ;;  %8823 = vmatmul.mubr.f32.vlgmr.msra.gmra.mrb[22].mxu1 %v5080_v32  ;;  %v6436_v26 = vsub.f32 %v10122_v10, %v6435_v19 }
 0x35e   :  { %8806 = vmatpush3.msra.mxu0 %v9992_v48  ;;  %8807 = vmatprep.mubr.msk.f32.mxu0 %vm9394_vm1, %v9393_v3  ;;  %v5977_v22 = vsub.f32 %v5975_v14, %v5976_v17 }
 0x35f   :  { %8815 = vmatprep.subr.mxu0 %v9393_v3  ;;  %8831 = vmatpush3.msra.mxu1 %v9992_v48  ;;  %v9252_v48 = vld [vmem:[#allocation7 + $0x30] sm:$0xff]  ;;  %v6437_v37 = vand.u32 4294901760, %v6436_v26 }
 0x360   :  { %8832 = vmatprep.mubr.msk.f32.mxu1 %vm9394_vm1, %v9393_v3  ;;  %8840 = vmatprep.subr.mxu1 %v9393_v3  ;;  %v10149_v20 = vand.u32 4294901760, %v9252_v48  ;;  %v5978_v31 = vand.u32 4294901760, %v5977_v22 }
 0x361   :  { %8808 = vmatmul.mubr.f32.vlgmr.msra.gmra.mrb[20].mxu0 %v5082_v53  ;;  %8833 = vmatmul.mubr.f32.vlgmr.msra.gmra.mrb[24].mxu1 %v10026_v41 }
 0x362   :  { %8816 = vmatpush3.msra.mxu0 %v10006_v27  ;;  %8817 = vmatprep.mubr.msk.f32.mxu0 %vm9394_vm1, %v9393_v3  ;;  %v10166_v30 = vsub.f32 %v9252_v48, %v10149_v20  ;;  %v6423_v27 = vsub.f32 %v6354_v58, %v10156_v29 }
 0x363   :  { %8825 = vmatprep.subr.mxu0 %v9393_v3  ;;  %8841 = vmatpush3.msra.mxu1 %v5541_v44  ;;  %v7742_v44 = vld [vmem:[%s10411_s7] sm:$0xff] }
 0x364   :  { %8842 = vmatprep.mubr.msk.f32.mxu1 %vm9394_vm1, %v9393_v3  ;;  %8850 = vmatprep.subr.mxu1 %v9393_v3  ;;  %v6424_v47 = vand.u32 4294901760, %v6423_v27  ;;  %v7778_v55 = vand.u32 4294901760, %v7742_v44 }
 0x365   :  { %8818 = vmatmul.mubr.f32.vlgmr.msra.gmra.mrb[22].mxu0 %v5079_v25  ;;  %8843 = vmatmul.mubr.f32.vlgmr.msra.gmra.mrb[26].mxu1 %v10067_v8 }
 0x366   :  { %8826 = vmatpush3.msra.mxu0 %v5091_v2  ;;  %8827 = vmatprep.mubr.msk.f32.mxu0 %vm9394_vm1, %v9393_v3  ;;  %v6883_v2 = vand.u32 4294901760, %v10166_v30  ;;  %v6425_v23 = vsub.f32 %v6423_v27, %v6424_v47  ;;  %v10299_v56 = vsub.f32 %v7742_v44, %v7778_v55 }
 0x367   :  { %8835 = vmatprep.subr.mxu0 %v9393_v3  ;;  %8851 = vmatpush3.msra.mxu1 %v10020_v40 }
 0x368   :  { %8852 = vmatprep.mubr.msk.f32.mxu1 %vm9394_vm1, %v9393_v3  ;;  %8860 = vmatprep.subr.mxu1 %v9393_v3  ;;  %v6884_v28 = vsub.f32 %v10166_v30, %v6883_v2  ;;  %v6426_v35 = vand.u32 4294901760, %v6425_v23 }
 0x369   :  { %8828 = vmatmul.mubr.f32.vlgmr.msra.gmra.mrb[24].mxu0 %v10026_v41  ;;  %8853 = vmatmul.mubr.f32.vlgmr.msra.gmra.mrb[28].mxu1 %v5528_v57  ;;  %v10198_v41 = vand.u32 4294901760, %v6802_v21 }
 0x36a   :  { %8836 = vmatpush3.msra.mxu0 %v10020_v40  ;;  %8837 = vmatprep.mubr.msk.f32.mxu0 %vm9394_vm1, %v9393_v3  ;;  %v6885_v25 = vand.u32 4294901760, %v6884_v28 }
 0x36b   :  { %8845 = vmatprep.subr.mxu0 %v9393_v3  ;;  %8861 = vmatpush3.msra.mxu1 %v10020_v40  ;;  %v10191_v40 = vand.u32 4294901760, %v9253_v38 }
 0x36c   :  { %8862 = vmatprep.mubr.msk.f32.mxu1 %vm9394_vm1, %v9393_v3  ;;  %8870 = vmatprep.subr.mxu1 %v9393_v3 }
 0x36d   :  { %8838 = vmatmul.mubr.f32.vlgmr.msra.gmra.mrb[26].mxu0 %v5530_v12  ;;  %8863 = vmatmul.mubr.f32.vlgmr.msra.gmra.mrb[30].mxu1 %v10067_v8  ;;  %v10208_v24 = vsub.f32 %v9253_v38, %v10191_v40 }
 0x36e   :  { %8846 = vmatpush3.msra.mxu0 %v10036_v42  ;;  %8847 = vmatprep.mubr.msk.f32.mxu0 %vm9394_vm1, %v9393_v3  ;;  %v6871_v42 = vsub.f32 %v6802_v21, %v10198_v41 }
 0x36f   :  { %8855 = vmatprep.subr.mxu0 %v9393_v3  ;;  %8871 = vmatpush3.msra.mxu1 %v5989_v39 }
 0x370   :  { %8872 = vmatprep.mubr.msk.f32.mxu1 %vm9394_vm1, %v9393_v3  ;;  %8880 = vmatprep.subr.mxu1 %v9393_v3  ;;  %v6872_v32 = vand.u32 4294901760, %v6871_v42 }
 0x371   :  { %8848 = vmatmul.mubr.f32.vlgmr.msra.gmra.mrb[28].mxu0 %v5527_v45  ;;  %8873 = vmatmul.mubr.f32.vlgmr.msra.gmra.mrb[32].mxu1 %v10112_v6  ;;  %v7743_v45 = vld [vmem:[%s10411_s7 + $0x8] sm:$0xff] }
 0x372   :  { %8856 = vmatpush3.msra.mxu0 %v5539_v52  ;;  %8857 = vmatprep.mubr.msk.f32.mxu0 %vm9394_vm1, %v9393_v3  ;;  %v7331_v52 = vand.u32 4294901760, %v10208_v24  ;;  %v6873_v59 = vsub.f32 %v6871_v42, %v6872_v32  ;;  %v7781_v57 = vand.u32 4294901760, %v7743_v45 }
 0x373   :  { %8865 = vmatprep.subr.mxu0 %v9393_v3  ;;  %8881 = vmatpush3.msra.mxu1 %v10060_v43 }
 0x374   :  { %8882 = vmatprep.mubr.msk.f32.mxu1 %vm9394_vm1, %v9393_v3  ;;  %8890 = vmatprep.subr.mxu1 %v9393_v3  ;;  %v7332_v60 = vsub.f32 %v10208_v24, %v7331_v52  ;;  %v6874_v49 = vand.u32 4294901760, %v6873_v59  ;;  %v10301_v5 = vsub.f32 %v7743_v45, %v7781_v57 }
 0x375   :  { %8858 = vmatmul.mubr.f32.vlgmr.msra.gmra.mrb[30].mxu0 %v10067_v8  ;;  %8883 = vmatmul.mubr.f32.vlgmr.msra.gmra.mrb[34].mxu1 %v5976_v17 }
 0x376   :  { %8866 = vmatpush3.msra.mxu0 %v10060_v43  ;;  %8867 = vmatprep.mubr.msk.f32.mxu0 %vm9394_vm1, %v9393_v3  ;;  %v7333_v7 = vand.u32 4294901760, %v7332_v60  ;;  %v7866_v15 = vand.u32 4294901760, %v10301_v5  ;;  %v9064_v38 = vpack.c.bf16 %v10301_v5, %v10299_v56 }
 0x377   :  { %8875 = vmatprep.subr.mxu0 %v9393_v3  ;;  %8891 = vmatpush3.msra.mxu1 %v10060_v43  ;;  %v7318_v43 = vand.u32 4294901760, %v7250_v54 }
 0x378   :  { %8892 = vmatprep.mubr.msk.f32.mxu1 %vm9394_vm1, %v9393_v3  ;;  %8900 = vmatprep.subr.mxu1 %v9393_v3  ;;  %v7867_v58 = vsub.f32 %v10301_v5, %v7866_v15 }
 0x379   :  { %8868 = vmatmul.mubr.f32.vlgmr.msra.gmra.mrb[32].mxu0 %v5978_v31  ;;  %8893 = vmatmul.mubr.f32.vlgmr.msra.gmra.mrb[36].mxu1 %v10112_v6  ;;  %v7319_v8 = vsub.f32 %v7250_v54, %v7318_v43 }
 0x37a   :  { %8876 = vmatpush3.msra.mxu0 %v10078_v50  ;;  %8877 = vmatprep.mubr.msk.f32.mxu0 %vm9394_vm1, %v9393_v3 }
 0x37b   :  { %8885 = vmatprep.subr.mxu0 %v9393_v3  ;;  %8901 = vmatpush3.msra.mxu1 %v6437_v37  ;;  %v7320_v0 = vand.u32 4294901760, %v7319_v8 }
 0x37c   :  { %8902 = vmatprep.mubr.msk.f32.mxu1 %vm9394_vm1, %v9393_v3  ;;  %8910 = vmatprep.subr.mxu1 %v9393_v3 }
 0x37d   :  { %8878 = vmatmul.mubr.f32.vlgmr.msra.gmra.mrb[34].mxu0 %v5975_v14  ;;  %8903 = vmatmul.mubr.f32.vlgmr.msra.gmra.mrb[38].mxu1 %v10156_v29  ;;  %v7321_v50 = vsub.f32 %v7319_v8, %v7320_v0  ;;  %v7859_v14 = vand.u32 4294901760, %v10299_v56 }
 0x37e   :  { %8886 = vmatpush3.msra.mxu0 %v5987_v61  ;;  %8887 = vmatprep.mubr.msk.f32.mxu0 %vm9394_vm1, %v9393_v3  ;;  %v10289_v61 = vpack.c.bf16 %v7781_v57, %v7778_v55 }
 0x37f   :  { %8895 = vmatprep.subr.mxu0 %v9393_v3  ;;  %8911 = vmatpush3.msra.mxu1 %v10105_v4  ;;  %v7322_v53 = vand.u32 4294901760, %v7321_v50  ;;  %v10319_v17 = vpack.c.bf16 %v7866_v15, %v7859_v14 }
 0x380   :  { %8912 = vmatprep.mubr.msk.f32.mxu1 %vm9394_vm1, %v9393_v3  ;;  %8920 = vmatprep.subr.mxu1 %v9393_v3 }
 0x381   :  { %8888 = vmatmul.mubr.f32.vlgmr.msra.gmra.mrb[36].mxu0 %v10112_v6  ;;  %8913 = vmatmul.mubr.f32.vlgmr.msra.gmra.mrb[40].mxu1 %v6424_v47  ;;  %v7784_v6 = vand.u32 4294901760, %v7744_v1 }
 0x382   :  { %8896 = vmatpush3.msra.mxu0 %v10105_v4  ;;  %8897 = vmatprep.mubr.msk.f32.mxu0 %vm9394_vm1, %v9393_v3 }
 0x383   :  { %8905 = vmatprep.subr.mxu0 %v9393_v3  ;;  %8921 = vmatpush3.msra.mxu1 %v10105_v4  ;;  %v7745_v4 = vld [vmem:[%s10411_s7 + $0x18] sm:$0xff]  ;;  %v10309_v12 = vsub.f32 %v7744_v1, %v7784_v6 }
 0x384   :  { %8922 = vmatprep.mubr.msk.f32.mxu1 %vm9394_vm1, %v9393_v3  ;;  %8930 = vmatprep.subr.mxu1 %v9393_v3  ;;  %v7787_v9 = vand.u32 4294901760, %v7745_v4 }
 0x385   :  { %8898 = vmatmul.mubr.f32.vlgmr.msra.gmra.mrb[38].mxu0 %v6426_v35  ;;  %8923 = vmatmul.mubr.f32.vlgmr.msra.gmra.mrb[42].mxu1 %v10156_v29  ;;  %v7873_v22 = vand.u32 4294901760, %v10309_v12 }
 0x386   :  { %8906 = vmatpush3.msra.mxu0 %v10122_v10  ;;  %8907 = vmatprep.mubr.msk.f32.mxu0 %vm9394_vm1, %v9393_v3  ;;  %v10307_v10 = vpack.c.bf16 %v7787_v9, %v7784_v6  ;;  %v10311_v39 = vsub.f32 %v7745_v4, %v7787_v9  ;;  %v7704_v6 = vrot.slane %v10337_v46, 2 }
 0x387   :  { %8915 = vmatprep.subr.mxu0 %v9393_v3  ;;  %8931 = vmatpush3.msra.mxu1 %v6885_v25  ;;  %v7874_v31 = vsub.f32 %v10309_v12, %v7873_v22 }
 0x388   :  { %8932 = vmatprep.mubr.msk.f32.mxu1 %vm9394_vm1, %v9393_v3  ;;  %8940 = vmatprep.subr.mxu1 %v9393_v3  ;;  %v7880_v26 = vand.u32 4294901760, %v10311_v39 }
 0x389   :  { %8908 = vmatmul.mubr.f32.vlgmr.msra.gmra.mrb[40].mxu0 %v6423_v27  ;;  %8933 = vmatmul.mubr.f32.vlgmr.msra.gmra.mrb[44].mxu1 %v10198_v41  ;;  %v7875_v27 = vand.u32 4294901760, %v7874_v31 }
 0x38a   :  { %8916 = vmatpush3.msra.mxu0 %v6435_v19  ;;  %8917 = vmatprep.mubr.msk.f32.mxu0 %vm9394_vm1, %v9393_v3  ;;  %v7860_v19 = vsub.f32 %v10299_v56, %v7859_v14  ;;  %v7881_v37 = vsub.f32 %v10311_v39, %v7880_v26  ;;  %v8282_v56 = vld [vmem:[%s10412_s8] ss:$0 sm:$0xff] }
 0x38b   :  { %8925 = vmatprep.subr.mxu0 %v9393_v3  ;;  %8941 = vmatpush3.msra.mxu1 %v10149_v20 }
 0x38c   :  { %8942 = vmatprep.mubr.msk.f32.mxu1 %vm9394_vm1, %v9393_v3  ;;  %8950 = vmatprep.subr.mxu1 %v9393_v3  ;;  %v7861_v48 = vand.u32 4294901760, %v7860_v19  ;;  %v7882_v63 = vand.u32 4294901760, %v7881_v37 }
 0x38d   :  { %8918 = vmatmul.mubr.f32.vlgmr.msra.gmra.mrb[42].mxu0 %v10156_v29  ;;  %8943 = vmatmul.mubr.f32.vlgmr.msra.gmra.mrb[46].mxu1 %v6872_v32  ;;  %v7703_v32 = vrot.slane %v10337_v46, 1 }
 0x38e   :  { %8926 = vmatpush3.msra.mxu0 %v10149_v20  ;;  %8927 = vmatprep.mubr.msk.f32.mxu0 %vm9394_vm1, %v9393_v3  ;;  %v10331_v47 = vpack.c.bf16 %v7882_v63, %v7875_v27 }
 0x38f   :  { %8935 = vmatprep.subr.mxu0 %v9393_v3  ;;  %8951 = vmatpush3.msra.mxu1 %v10149_v20  ;;  %v7868_v20 = vand.u32 4294901760, %v7867_v58  ;;  %9230 = vrcp.f32 %v7703_v32 }
 0x390   :  { %8952 = vmatprep.mubr.msk.f32.mxu1 %vm9394_vm1, %v9393_v3  ;;  %8960 = vmatprep.subr.mxu1 %v9393_v3  ;;  %9232 = vrcp.f32 %v10337_v46 }
 0x391   :  { %8928 = vmatmul.mubr.f32.vlgmr.msra.gmra.mrb[44].mxu0 %v6874_v49  ;;  %8953 = vmatmul.mubr.f32.vlgmr.msra.gmra.mrb[48].mxu1 %v10198_v41  ;;  %v10325_v29 = vpack.c.bf16 %v7868_v20, %v7861_v48  ;;  %9234 = vrcp.f32 %v7704_v6 }
 0x392   :  { %8936 = vmatpush3.msra.mxu0 %v10166_v30  ;;  %8937 = vmatprep.mubr.msk.f32.mxu0 %vm9394_vm1, %v9393_v3  ;;  %v10327_v30 = vpack.c.bf16 %v7880_v26, %v7873_v22 }
 0x393   :  { %8945 = vmatprep.subr.mxu0 %v9393_v3  ;;  %8961 = vmatpush3.msra.mxu1 %v7333_v7 }
 0x394   :  { %8962 = vmatprep.mubr.msk.f32.mxu1 %vm9394_vm1, %v9393_v3  ;;  %8970 = vmatprep.subr.mxu1 %v9393_v3 }
 0x395   :  { %8938 = vmatmul.mubr.f32.vlgmr.msra.gmra.mrb[46].mxu0 %v6871_v42  ;;  %8963 = vmatmul.mubr.f32.vlgmr.msra.gmra.mrb[50].mxu1 %v7318_v43 }
 0x396   :  { %8946 = vmatpush3.msra.mxu0 %v6883_v2  ;;  %8947 = vmatprep.mubr.msk.f32.mxu0 %vm9394_vm1, %v9393_v3 }
 0x397   :  { %8955 = vmatprep.subr.mxu0 %v9393_v3  ;;  %8971 = vmatpush3.msra.mxu1 %v10191_v40 }
 0x398   :  { %8972 = vmatprep.mubr.msk.f32.mxu1 %vm9394_vm1, %v9393_v3  ;;  %8980 = vmatprep.subr.mxu1 %v9393_v3 }
 0x399   :  { %8948 = vmatmul.mubr.f32.vlgmr.msra.gmra.mrb[48].mxu0 %v10198_v41  ;;  %8973 = vmatmul.mubr.f32.vlgmr.msra.gmra.mrb[52].mxu1 %v7320_v0  ;;  %v9231_v48 = vpop.eup %9230 }
 0x39a   :  { %8956 = vmatpush3.msra.mxu0 %v10191_v40  ;;  %8957 = vmatprep.mubr.msk.f32.mxu0 %vm9394_vm1, %v9393_v3  ;;  %v9233_v22 = vpop.eup %9232  ;;  %v7721_v27 = vmul.f32 %v9231_v48, %v9544_v34 }
 0x39b   :  { %8965 = vmatprep.subr.mxu0 %v9393_v3  ;;  %8981 = vmatpush3.msra.mxu1 %v10191_v40  ;;  %v9067_v40 = vpack.c.bf16 %v10311_v39, %v10309_v12 }
 0x39c   :  { %8982 = vmatprep.mubr.msk.f32.mxu1 %vm9394_vm1, %v9393_v3  ;;  %9051 = vmatprep.subr.bf16.mxu1 %v9397_v62 }
 0x39d   :  { %8958 = vmatmul.mubr.f32.vlgmr.msra.gmra.mrb[50].mxu0 %v7322_v53  ;;  %8983 = vmatmul.mubr.f32.vlgmr.msra.gmra.mrb[54].mxu1 %v7318_v43 }
 0x39e   :  { %8966 = vmatpush3.msra.mxu0 %v10208_v24  ;;  %8967 = vmatprep.mubr.msk.f32.mxu0 %vm9394_vm1, %v9393_v3 }
 0x39f   :  { %8975 = vmatprep.subr.mxu0 %v9393_v3  ;;  %8993 = vmatprep.mubr.msk.f32.mxu1 %vm9394_vm1, %v9393_v3 }
 0x3a0   :  { %9053 = vmatpush3.bf16.msra.mxu1 %v10289_v61 }
 0x3a1   :  { %8968 = vmatmul.mubr.f32.vlgmr.msra.gmra.mrb[52].mxu0 %v7319_v8  ;;  %9054 = vmatprep.subr.bf16.mxu1 %v9397_v62 }
 0x3a2   :  { %8976 = vmatpush3.msra.mxu0 %v7331_v52  ;;  %8977 = vmatprep.mubr.msk.f32.mxu0 %vm9394_vm1, %v9393_v3 }
 0x3a3   :  { %9069 = vmatprep.subr.bf16.mxu0 %v9397_v62 }
 0x3a4   :  { %9056 = vmatpush3.bf16.msra.mxu1 %v10307_v10 }
 0x3a5   :  { %8978 = vmatmul.mubr.f32.vlgmr.msra.gmra.mrb[54].mxu0 %v7318_v43  ;;  %9057 = vmatprep.subr.bf16.mxu1 %v9397_v62 }
 0x3a6   :  { %9026 = vmatprep.mubr.msk.f32.mxu0 %vm9394_vm1, %v9393_v3  ;;  %9071 = vmatpush3.bf16.msra.mxu0 %v10289_v61 }
 0x3a7   :  { %9072 = vmatprep.subr.bf16.mxu0 %v9397_v62 }
 0x3aa   :  { %9074 = vmatpush3.bf16.msra.mxu0 %v10307_v10 }
 0x3ab   :  { %9075 = vmatprep.subr.bf16.mxu0 %v9397_v62 }
 0x414   :  { %v4264_v2 = vpop.f32.mrb[8].mxu1 }
 0x415   :  { %v8754_v21 = vpop.f32.mrb[9].mxu1 }
 0x416   :  { %v7719_v21 = vmul.f32 %v9233_v22, %v9542_v33 }
 0x418   :  { %v4412_v23 = vpop.f32.mrb[10].mxu1 }
 0x419   :  { %v8764_v28 = vpop.f32.mrb[11].mxu1 }
 0x41c   :  { %v4188_v41 = vpop.f32.mrb[8].mxu0  ;;  %v4558_v24 = vpop.f32.mrb[12].mxu1 }
 0x41d   :  { %v4265_v35 = vadd.f32 %v4264_v2, %v4188_v41  ;;  %v8749_v25 = vpop.f32.mrb[9].mxu0  ;;  %v8774_v42 = vpop.f32.mrb[13].mxu1 }
 0x420   :  { %v4338_v52 = vpop.f32.mrb[10].mxu0  ;;  %v4712_v54 = vpop.f32.mrb[14].mxu1 }
 0x421   :  { %v4339_v59 = vadd.f32 %v4338_v52, %v4265_v35  ;;  %v8759_v60 = vpop.f32.mrb[11].mxu0  ;;  %v8784_v43 = vpop.f32.mrb[15].mxu1 }
 0x423   :  { %v4413_v49 = vadd.f32 %v4412_v23, %v4339_v59 }
 0x424   :  { %v4486_v7 = vpop.f32.mrb[12].mxu0  ;;  %v4860_v8 = vpop.f32.mrb[16].mxu1 }
 0x425   :  { %v4487_v0 = vadd.f32 %v4486_v7, %v4413_v49  ;;  %v8769_v50 = vpop.f32.mrb[13].mxu0  ;;  %v8794_v53 = vpop.f32.mrb[17].mxu1 }
 0x427   :  { %v4559_v44 = vadd.f32 %v4558_v24, %v4487_v0 }
 0x428   :  { %v4636_v45 = vpop.f32.mrb[14].mxu0  ;;  %v5006_v55 = vpop.f32.mrb[18].mxu1 }
 0x429   :  { %v4713_v57 = vadd.f32 %v4712_v54, %v4636_v45  ;;  %v8779_v1 = vpop.f32.mrb[15].mxu0  ;;  %v8804_v4 = vpop.f32.mrb[19].mxu1  ;;  %v7734_v32 = vadd.f32 %v7719_v21, %v4559_v44  ;;  %v7705_v54 = vrot.slane %v10337_v46, 3 }
 0x42b   :  { %9236 = vrcp.f32 %v7705_v54 }
 0x42c   :  { %v4786_v9 = vpop.f32.mrb[16].mxu0  ;;  %v5160_v14 = vpop.f32.mrb[20].mxu1 }
 0x42d   :  { %v4787_v15 = vadd.f32 %v4786_v9, %v4713_v57  ;;  %v8789_v19 = vpop.f32.mrb[17].mxu0  ;;  %v8814_v58 = vpop.f32.mrb[21].mxu1 }
 0x42e   :  { %v7706_v58 = vrot.slane %v10337_v46, 4 }
 0x42f   :  { %v4861_v20 = vadd.f32 %v4860_v8, %v4787_v15  ;;  %v9235_v8 = vpop.eup %9234 }
 0x430   :  { %v4934_v26 = vpop.f32.mrb[18].mxu0  ;;  %v5308_v31 = vpop.f32.mrb[22].mxu1  ;;  %v7723_v45 = vmul.f32 %v9235_v8, %v9614_v36  ;;  %9238 = vrcp.f32 %v7706_v58 }
 0x431   :  { %v4935_v37 = vadd.f32 %v4934_v26, %v4861_v20  ;;  %v8799_v63 = vpop.f32.mrb[19].mxu0  ;;  %v8824_v2 = vpop.f32.mrb[23].mxu1 }
 0x433   :  { %v5007_v23 = vadd.f32 %v5006_v55, %v4935_v37 }
 0x434   :  { %v5084_v28 = vpop.f32.mrb[20].mxu0  ;;  %v5454_v41 = vpop.f32.mrb[24].mxu1 }
 0x435   :  { %v7735_v24 = vadd.f32 %v7721_v27, %v5007_v23  ;;  %v5161_v35 = vadd.f32 %v5160_v14, %v5084_v28  ;;  %v8809_v25 = vpop.f32.mrb[21].mxu0  ;;  %v8834_v42 = vpop.f32.mrb[25].mxu1 }
 0x436   :  { %v9237_v36 = vpop.eup %9236 }
 0x437   :  { %v7761_v52 = vrot.slane %v7735_v24, 7  ;;  %v7725_v23 = vmul.f32 %v9237_v36, %v9622_v51 }
 0x438   :  { %v5234_v59 = vpop.f32.mrb[22].mxu0  ;;  %v5608_v60 = vpop.f32.mrb[26].mxu1 }
 0x439   :  { %v7762_v43 = vsel %vm187_vm2, %v7761_v52, %v7734_v32  ;;  %v5235_v34 = vadd.f32 %v5234_v59, %v5161_v35  ;;  %v8819_v49 = vpop.f32.mrb[23].mxu0  ;;  %v8844_v7 = vpop.f32.mrb[27].mxu1  ;;  %vm10415_vm2 = vcmask 261120  }
 0x43a   :  { %v9239_v51 = vpop.eup %9238 }
 0x43b   :  { %v5309_v33 = vadd.f32 %v5308_v31, %v5235_v34 }
 0x43c   :  { %v5382_v0 = vpop.f32.mrb[24].mxu0  ;;  %v5756_v50 = vpop.f32.mrb[28].mxu1 }
 0x43d   :  { %v5383_v53 = vadd.f32 %v5382_v0, %v5309_v33  ;;  %v8829_v55 = vpop.f32.mrb[25].mxu0  ;;  %v8854_v44 = vpop.f32.mrb[29].mxu1 }
 0x43e   :  { %v7727_v55 = vmul.f32 %v9239_v51, %v9635_v11 }
 0x43f   :  { %v5455_v57 = vadd.f32 %v5454_v41, %v5383_v53 }
 0x440   :  { %v5532_v1 = vpop.f32.mrb[26].mxu0  ;;  %v5902_v4 = vpop.f32.mrb[30].mxu1 }
 0x441   :  { %v7736_v6 = vadd.f32 %v7723_v45, %v5455_v57  ;;  %v5609_v9 = vadd.f32 %v5608_v60, %v5532_v1  ;;  %v8839_v14 = vpop.f32.mrb[27].mxu0  ;;  %v8864_v15 = vpop.f32.mrb[31].mxu1  ;;  %v7707_v60 = vrot.slane %v10337_v46, 5 }
 0x443   :  { %v7763_v19 = vrot.slane %v7736_v6, 6  ;;  %9240 = vrcp.f32 %v7707_v60 }
 0x444   :  { %v5682_v48 = vpop.f32.mrb[28].mxu0  ;;  %v6056_v20 = vpop.f32.mrb[32].mxu1 }
 0x445   :  { %v7764_v22 = vsel %vm189_vm3, %v7763_v19, %v7762_v43  ;;  %v5683_v26 = vadd.f32 %v5682_v48, %v5609_v9  ;;  %v8849_v31 = vpop.f32.mrb[29].mxu0  ;;  %v8874_v37 = vpop.f32.mrb[33].mxu1  ;;  %v7708_v48 = vrot.slane %v10337_v46, 6 }
 0x447   :  { %v5757_v27 = vadd.f32 %v5756_v50, %v5683_v26  ;;  %9242 = vrcp.f32 %v7708_v48 }
 0x448   :  { %v5830_v63 = vpop.f32.mrb[30].mxu0  ;;  %v6204_v2 = vpop.f32.mrb[34].mxu1 }
 0x449   :  { %v5831_v21 = vadd.f32 %v5830_v63, %v5757_v27  ;;  %v8859_v28 = vpop.f32.mrb[31].mxu0  ;;  %v8884_v41 = vpop.f32.mrb[35].mxu1 }
 0x44b   :  { %v5903_v24 = vadd.f32 %v5902_v4, %v5831_v21 }
 0x44c   :  { %v5980_v35 = vpop.f32.mrb[32].mxu0  ;;  %v6350_v25 = vpop.f32.mrb[36].mxu1 }
 0x44d   :  { %v7737_v42 = vadd.f32 %v7725_v23, %v5903_v24  ;;  %v6057_v32 = vadd.f32 %v6056_v20, %v5980_v35  ;;  %v8869_v52 = vpop.f32.mrb[33].mxu0  ;;  %v8894_v54 = vpop.f32.mrb[37].mxu1 }
 0x44e   :  { %v9241_v11 = vpop.eup %9240 }
 0x44f   :  { %v7765_v59 = vrot.slane %v7737_v42, 5  ;;  %v7729_v23 = vmul.f32 %v9241_v11, %v9640_v13  ;;  %v7709_v13 = vrot.slane %v10337_v46, 7 }
 0x450   :  { %v6130_v43 = vpop.f32.mrb[34].mxu0  ;;  %v6504_v34 = vpop.f32.mrb[38].mxu1 }
 0x451   :  { %v7766_v49 = vsel %vm191_vm4, %v7765_v59, %v7764_v22  ;;  %v6131_v7 = vadd.f32 %v6130_v43, %v6057_v32  ;;  %v8879_v8 = vpop.f32.mrb[35].mxu0  ;;  %v8904_v33 = vpop.f32.mrb[39].mxu1  ;;  %9244 = vrcp.f32 %v7709_v13 }
 0x452   :  { %v9243_v33 = vpop.eup %9242 }
 0x453   :  { %v6205_v0 = vadd.f32 %v6204_v2, %v6131_v7 }
 0x454   :  { %v6278_v50 = vpop.f32.mrb[36].mxu0  ;;  %v6652_v53 = vpop.f32.mrb[40].mxu1 }
 0x455   :  { %v6279_v45 = vadd.f32 %v6278_v50, %v6205_v0  ;;  %v8889_v44 = vpop.f32.mrb[37].mxu0  ;;  %v8914_v57 = vpop.f32.mrb[41].mxu1 }
 0x457   :  { %v6351_v1 = vadd.f32 %v6350_v25, %v6279_v45  ;;  %v7731_v45 = vmul.f32 %v9243_v33, %v9643_v16 }
 0x458   :  { %v6428_v4 = vpop.f32.mrb[38].mxu0  ;;  %v6798_v6 = vpop.f32.mrb[42].mxu1 }
 0x459   :  { %v7738_v9 = vadd.f32 %v7727_v55, %v6351_v1  ;;  %v6505_v14 = vadd.f32 %v6504_v34, %v6428_v4  ;;  %v8899_v15 = vpop.f32.mrb[39].mxu0  ;;  %v8924_v19 = vpop.f32.mrb[43].mxu1 }
 0x45b   :  { %v7767_v58 = vrot.slane %v7738_v9, 4 }
 0x45c   :  { %v6578_v20 = vpop.f32.mrb[40].mxu0  ;;  %v6952_v22 = vpop.f32.mrb[44].mxu1 }
 0x45d   :  { %v7768_v26 = vsel %vm193_vm5, %v7767_v58, %v7766_v49  ;;  %v6579_v31 = vadd.f32 %v6578_v20, %v6505_v14  ;;  %v8909_v37 = vpop.f32.mrb[41].mxu0  ;;  %v8934_v36 = vpop.f32.mrb[45].mxu1 }
 0x45f   :  { %v6653_v27 = vadd.f32 %v6652_v53, %v6579_v31 }
 0x460   :  { %v6726_v63 = vpop.f32.mrb[42].mxu0  ;;  %v7100_v2 = vpop.f32.mrb[46].mxu1 }
 0x461   :  { %v6727_v21 = vadd.f32 %v6726_v63, %v6653_v27  ;;  %v8919_v28 = vpop.f32.mrb[43].mxu0  ;;  %v8944_v41 = vpop.f32.mrb[47].mxu1 }
 0x463   :  { %v6799_v24 = vadd.f32 %v6798_v6, %v6727_v21 }
 0x464   :  { %v6876_v35 = vpop.f32.mrb[44].mxu0  ;;  %v7246_v25 = vpop.f32.mrb[48].mxu1 }
 0x465   :  { %v7739_v42 = vadd.f32 %v7729_v23, %v6799_v24  ;;  %v6953_v32 = vadd.f32 %v6952_v22, %v6876_v35  ;;  %v8929_v52 = vpop.f32.mrb[45].mxu0  ;;  %v8954_v54 = vpop.f32.mrb[49].mxu1 }
 0x467   :  { %v7769_v59 = vrot.slane %v7739_v42, 3 }
 0x468   :  { %v7026_v60 = vpop.f32.mrb[46].mxu0  ;;  %v7400_v43 = vpop.f32.mrb[50].mxu1 }
 0x469   :  { %v7770_v34 = vsel %vm195_vm6, %v7769_v59, %v7768_v26  ;;  %v7027_v49 = vadd.f32 %v7026_v60, %v6953_v32  ;;  %v8939_v7 = vpop.f32.mrb[47].mxu0  ;;  %v8964_v8 = vpop.f32.mrb[51].mxu1 }
 0x46a   :  { %v9245_v26 = vpop.eup %9244 }
 0x46b   :  { %v7101_v51 = vadd.f32 %v7100_v2, %v7027_v49  ;;  %v7733_v11 = vmul.f32 %v9245_v26, %v9647_v18 }
 0x46c   :  { %v7174_v0 = vpop.f32.mrb[48].mxu0  ;;  %v7548_v50 = vpop.f32.mrb[52].mxu1 }
 0x46d   :  { %v7175_v53 = vadd.f32 %v7174_v0, %v7101_v51  ;;  %v8949_v55 = vpop.f32.mrb[49].mxu0  ;;  %v8974_v44 = vpop.f32.mrb[53].mxu1 }
 0x46f   :  { %v7247_v57 = vadd.f32 %v7246_v25, %v7175_v53 }
 0x470   :  { %v7324_v1 = vpop.f32.mrb[50].mxu0  ;;  %v7694_v4 = vpop.f32.mrb[54].mxu1 }
 0x471   :  { %v7740_v6 = vadd.f32 %v7731_v45, %v7247_v57  ;;  %v7401_v9 = vadd.f32 %v7400_v43, %v7324_v1  ;;  %v8959_v14 = vpop.f32.mrb[51].mxu0  ;;  %v8984_v15 = vpop.f32.mrb[55].mxu1 }
 0x473   :  { %v7771_v19 = vrot.slane %v7740_v6, 2 }
 0x474   :  { %v7474_v58 = vpop.f32.mrb[52].mxu0 }
 0x475   :  { %v7772_v46 = vsel %vm197_vm7, %v7771_v19, %v7770_v34  ;;  %v7475_v48 = vadd.f32 %v7474_v58, %v7401_v9  ;;  %v8969_v20 = vpop.f32.mrb[53].mxu0 }
 0x477   :  { %v7549_v22 = vadd.f32 %v7548_v50, %v7475_v48 }
 0x478   :  { %v7622_v31 = vpop.f32.mrb[54].mxu0 }
 0x479   :  { %v7623_v16 = vadd.f32 %v7622_v31, %v7549_v22  ;;  %v8979_v37 = vpop.f32.mrb[55].mxu0 }
 0x47b   :  { %v7695_v36 = vadd.f32 %v7694_v4, %v7623_v16 }
 0x47d   :  { %v7741_v27 = vadd.f32 %v7733_v11, %v7695_v36 }
 0x47f   :  { %v7773_v63 = vrot.slane %v7741_v27, 1 }
 0x481   :  { %v7774_v2 = vsel %vm199_vm8, %v7773_v63, %v7772_v46 }
 0x482   :  { %v7775_v21 = vsel %vm10415_vm2, %v7774_v2, 0 }
 0x483   :  { %v7846_v23 = vand.u32 4294901760, %v7775_v21 }
 0x485   :  { %v7847_v28 = vsub.f32 %v7775_v21, %v7846_v23 }
 0x487   :  { %v7848_v41 = vand.u32 4294901760, %v7847_v28 }
 0x489   :  { %9027 = vmatmul.mubr.f32.vlgmr.msra.gmra.mrb[56].mxu0 %v7848_v41  ;;  %v7849_v24 = vsub.f32 %v7847_v28, %v7848_v41 }
 0x48a   :  { %9077 = vmatpush3.bf16.msra.mxu0 %v10319_v17  ;;  %9037 = vmatprep.mubr.msk.f32.mxu0 %vm9394_vm1, %v9393_v3 }
 0x48b   :  { %v7850_v35 = vand.u32 4294901760, %v7849_v24  ;;  %9078 = vmatprep.subr.bf16.mxu0 %v9397_v62 }
 0x48d   :  { %8994 = vmatmul.mubr.f32.vlgmr.msra.gmra.mrb[56].mxu1 %v7850_v35 }
 0x48e   :  { %9059 = vmatpush3.bf16.msra.mxu1 %v10325_v29  ;;  %9080 = vmatpush3.bf16.msra.mxu0 %v10327_v30 }
 0x48f   :  { %9060 = vmatprep.subr.bf16.mxu1 %v9397_v62  ;;  %9081 = vmatprep.subr.bf16.mxu0 %v9397_v62 }
 0x490   :  { %9004 = vmatprep.mubr.msk.f32.mxu1 %vm9394_vm1, %v9393_v3 }
 0x491   :  { %9038 = vmatmul.mubr.f32.vlgmr.msra.gmra.mrb[56].mxu0 %v7846_v23 }
 0x492   :  { %9062 = vmatpush3.bf16.msra.mxu1 %v10331_v47  ;;  %9083 = vmatpush3.bf16.msra.mxu0 %v10289_v61 }
 0x493   :  { %9063 = vmatprep.subr.bf16.mxu1 %v9397_v62  ;;  %9084 = vmatprep.subr.bf16.mxu0 %v9397_v62 }
 0x494   :  { %9048 = vmatprep.mubr.msk.f32.mxu0 %vm9394_vm1, %v9393_v3 }
 0x495   :  { %9005 = vmatmul.mubr.f32.vlgmr.msra.gmra.mrb[56].mxu1 %v7846_v23 }
 0x496   :  { %9065 = vmatpush3.bf16.msra.mxu1 %v9064_v38  ;;  %9086 = vmatpush3.bf16.msra.mxu0 %v10307_v10 }
 0x497   :  { %9066 = vmatprep.subr.bf16.mxu1 %v9397_v62  ;;  %9015 = vmatprep.mubr.msk.f32.mxu1 %vm9394_vm1, %v9393_v3 }
 0x499   :  { %9049 = vmatmul.mubr.f32.vlgmr.msra.gmra.mrb[56].mxu0 %v7846_v23 }
 0x49a   :  { %9068 = vmatpush3.bf16.msra.mxu1 %v9067_v40 }
 0x49d   :  { %9016 = vmatmul.mubr.f32.vlgmr.msra.gmra.mrb[56].mxu1 %v7847_v28 }
 0x56c   :  { %v8258_v18 = vpop.f32.mrb[56].mxu0 }
 0x56d   :  { %v9050_v61 = vpop.f32.mrb[57].mxu0 }
 0x570   :  { %v8023_v5 = vpop.f32.mrb[56].mxu1 }
 0x571   :  { %v9087_v10 = vadd.f32 %v8282_v56, %v8023_v5  ;;  %v9017_v62 = vpop.f32.mrb[57].mxu1 }
 0x573   :  { %v9088_v17 = vadd.f32 %v9087_v10, %v8258_v18 }
 0x575   :  { %8262 = vst [vmem:[#allocation13] sm:$0xff] %v9088_v17 }
 0x576   :  { %9365 = shalt.err (!%p9362_p13)
}
 0x577   :  { %s9366_s1 = scalar_lea.hbm %s10413_s9, 128 }
 0x578   :  { %p9367_p0 = scmp.ne.s32.totalorder %s10413_s9, %s9366_s1  ;;  %p9370_p1 = scmp.lt.u32.totalorder %s9366_s1, %s10413_s9 }
 0x57a   :  { %p9372_p2 = pnand %p9370_p1, %p9367_p0 }
 0x57c   :  { %9375 = shalt.err (!%p9372_p2)
}
 0x57d   :  { %8272 = dma.vmem_to_hbm [thread:$0]  %s8270_s29, 128, %s10413_s9, [#allocation5]  }
 0x57e   :  { %9384 = dma.done.wait [#allocation5], 128  }
 0x57f   :  { %9385 = vsyncadd [#allocation5], 4294967168 }
 0x580   :  { %8276 = vsyncpa [#allocation4], 1 }
 0x581   :  { %8277 = vsyncpa [#allocation8], 1 }
 0x582   :  { %8278 = vsyncpa [#allocation11], 1 }
 0x583   :  { %8279 = vsyncpa [#allocation5], 1 }
 0x584   :  { %8280 = vsyncpa [#allocation6], 1 }

</bundles_post_ra>
